<compile_context>
chip_gen: v7x
topology: tpu7x:2x2x1
jax: 0.10.0
libtpu: 0.0.40
codegen_flags: <defaults>
</compile_context>

<pallas_src>
import functools

import jax
import jax.numpy as jnp
from jax.experimental import pallas as pl
from jax.experimental.pallas import tpu as pltpu


def _round_up(x, m):
    return ((x + m - 1) // m) * m


def _cdiv(a, b):
    return -(-a // b)


# --------------------------------------------------------------------------- #
# Stage 1: conv1(pad=2) + bias + maxpool3x3(stride=1) + bn1 partial statistics #
# --------------------------------------------------------------------------- #
def _stage1_kernel(xb_ref, xn_ref, w_ref, b_ref, m1_ref, y_ref, st_ref, *, wpc, ltile):
    # xb/xn: current / next lane tile of the padded input canvas, (1, Cin, ltile)
    # w:     (Cout, 9*Cin) im2col weights, b: (Cout, 1), m1: (1, ltile) valid mask
    lext = ltile + 2 * wpc + 2                       # conv outputs needed by the pool
    xe = jnp.concatenate([xb_ref[0], xn_ref[0]], axis=1)        # (Cin, 2*ltile)

    # single K = 9*Cin contraction on the MXU instead of 9 K=Cin dots
    cols = [xe[:, ky * wpc + kx: ky * wpc + kx + lext]
            for ky in range(3) for kx in range(3)]
    xcol = jnp.concatenate(cols, axis=0)                        # (9*Cin, lext)
    co = jnp.dot(w_ref[...], xcol, preferred_element_type=jnp.float32)  # (Cout, lext)

    # fused 3x3 / stride-1 max pool epilogue (per-channel bias commutes with max)
    y = co[:, :ltile]
    for dy in range(3):
        for dx in range(3):
            if dy == 0 and dx == 0:
                continue
            off = dy * wpc + dx
            y = jnp.maximum(y, co[:, off:off + ltile])
    y = y + b_ref[...]                                          # (Cout, ltile)
    y_ref[0] = y.astype(y_ref.dtype)

    # bn1 partial stats over valid positions of this tile (finalized outside)
    msk = m1_ref[...] > 0.0
    yv = jnp.where(msk, y, 0.0)
    st_ref[0, 0] = jnp.concatenate(
        [jnp.sum(yv, axis=1, keepdims=True),
         jnp.sum(yv * yv, axis=1, keepdims=True)], axis=1)      # (Cout, 2)


# ------------------------------------------------------------------------------- #
# Stage 2: bn1 apply + ReLU + zero-pad ring + conv2(pad=1) + bias + bn2 partials   #
# ------------------------------------------------------------------------------- #
def _stage2_kernel(yb_ref, yn_ref, w_ref, b_ref, sc_ref, sh_ref,
                   mb_ref, mn_ref, m2_ref, z_ref, st_ref, *, wpc, ltile):
    lext = ltile + 2 * wpc + 2
    ye = jnp.concatenate([yb_ref[0], yn_ref[0]], axis=1)[:, :lext]      # (C, lext)
    me = jnp.concatenate([mb_ref[...], mn_ref[...]], axis=1)[:, :lext]  # (1, lext)

    # fused bn1 + ReLU; mask zeroes the canvas ring => conv2's zero padding
    a = jnp.where(me > 0.0,
                  jnp.maximum(sc_ref[...] * ye + sh_ref[...], 0.0),
                  0.0)

    cols = [a[:, ky * wpc + kx: ky * wpc + kx + ltile]
            for ky in range(3) for kx in range(3)]
    acol = jnp.concatenate(cols, axis=0)                         # (9*C, ltile)
    z = jnp.dot(w_ref[...], acol, preferred_element_type=jnp.float32) + b_ref[...]
    z_ref[0] = z.astype(z_ref.dtype)

    m2 = m2_ref[...] > 0.0
    zv = jnp.where(m2, z, 0.0)
    st_ref[0, 0] = jnp.concatenate(
        [jnp.sum(zv, axis=1, keepdims=True),
         jnp.sum(zv * zv, axis=1, keepdims=True)], axis=1)       # (Cout, 2)


# --------------------------------------------------------------------------- #
# Stage 3: bn2 apply + identity residual + ReLU                                #
# --------------------------------------------------------------------------- #
def _stage3_kernel(z_ref, r_ref, sc_ref, sh_ref, o_ref):
    o_ref[0] = jnp.maximum(
        sc_ref[...] * z_ref[0] + sh_ref[...] + r_ref[0], 0.0).astype(o_ref.dtype)


# --------------------------------------------------------------------------- #
# Wrapper                                                                      #
# --------------------------------------------------------------------------- #
def block8_forward(x, params, *, l_tile=512, eps=1e-5):
    """Block8.forward with stride=1, downsample=None (identity residual)."""
    n, c, h, w = x.shape
    cout = params["w1"].shape[0]
    assert params["w1"].shape == (cout, c, 3, 3)
    assert params["w2"].shape == (cout, cout, 3, 3)
    assert cout == c, "identity residual requires in_f == out_f"

    f32 = jnp.float32
    x = x.astype(f32)

    wpc = w + 5                                   # canvas row stride: 3 zero cols left, 2 right
    # lane tile: multiple of 128, big enough for the 3x3+3x3 halo, clamped to the span
    min_tile = _round_up(4 * wpc + 4, 128)
    span = _round_up((h + 1) * wpc, 128)
    ltile = max(min_tile, min(_round_up(l_tile, 128), span))

    t_out = _cdiv(h * wpc, ltile)                 # tiles covering z / out / residual canvas
    t_y1 = max(_cdiv((h + 1) * wpc, ltile), t_out + 1)   # y1 canvas: fully written by stage 1
    t_x = t_y1 + 1                                # x canvas keeps one extra halo tile
    l_out, l_y1, l_x = t_out * ltile, t_y1 * ltile, t_x * ltile

    # ---- input canvases (built once from the original input) -------------------
    rows_x = _cdiv(l_x, wpc)
    xc = jnp.pad(x, ((0, 0), (0, 0), (3, rows_x - h - 3), (3, wpc - w - 3)))
    xc = xc.reshape(n, c, rows_x * wpc)[:, :, :l_x]               # image at offset (3,3)

    xr = jnp.pad(x, ((0, 0), (0, 0), (0, 0), (0, wpc - w))).reshape(n, c, h * wpc)
    xr = jnp.pad(xr, ((0, 0), (0, 0), (0, l_out - h * wpc)))      # residual, offset (0,0)

    def _valid_mask(length, r0, c0):
        rows = _cdiv(length, wpc)
        rr = jax.lax.broadcasted_iota(jnp.int32, (rows, wpc), 0)
        cc = jax.lax.broadcasted_iota(jnp.int32, (rows, wpc), 1)
        m = (rr >= r0) & (rr < r0 + h) & (cc >= c0) & (cc < c0 + w)
        return m.astype(f32).reshape(1, rows * wpc)[:, :length]

    m1 = _valid_mask(l_y1, 1, 1)                  # y1 canvas: data at offset (1,1)
    m2 = _valid_mask(l_out, 0, 0)                 # z/out canvas: data at offset (0,0)

    # im2col weight layout: (Cout, (ky,kx,Cin)) matching the in-kernel concat order
    w1c = jnp.transpose(params["w1"].astype(f32), (0, 2, 3, 1)).reshape(cout, 9 * c)
    w2c = jnp.transpose(params["w2"].astype(f32), (0, 2, 3, 1)).reshape(cout, 9 * cout)
    b1 = params["b1"].astype(f32).reshape(cout, 1)
    b2 = params["b2"].astype(f32).reshape(cout, 1)

    cnt = jnp.asarray(n * h * w, f32)

    def _bn_affine(st, gamma, beta):
        s = jnp.sum(st[..., 0], axis=(0, 1))
        ss = jnp.sum(st[..., 1], axis=(0, 1))
        mean = s / cnt
        var = jnp.maximum(ss / cnt - mean * mean, 0.0)            # biased batch variance
        scale = gamma.astype(f32) / jnp.sqrt(var + eps)
        shift = beta.astype(f32) - mean * scale
        return scale.reshape(cout, 1), shift.reshape(cout, 1)

    # ---------------- stage 1 ----------------------------------------------------
    y1, st1 = pl.pallas_call(
        functools.partial(_stage1_kernel, wpc=wpc, ltile=ltile),
        out_shape=(jax.ShapeDtypeStruct((n, cout, l_y1), f32),
                   jax.ShapeDtypeStruct((n, t_y1, cout, 2), f32)),
        grid_spec=pltpu.PrefetchScalarGridSpec(
            num_scalar_prefetch=0,
            grid=(n, t_y1),
            in_specs=[
                pl.BlockSpec((1, c, ltile), lambda i, j: (i, 0, j)),       # x tile
                pl.BlockSpec((1, c, ltile), lambda i, j: (i, 0, j + 1)),   # x halo tile
                pl.BlockSpec((cout, 9 * c), lambda i, j: (0, 0)),          # w1 (im2col)
                pl.BlockSpec((cout, 1), lambda i, j: (0, 0)),              # b1
                pl.BlockSpec((1, ltile), lambda i, j: (0, j)),             # bn1 stat mask
            ],
            out_specs=(
                pl.BlockSpec((1, cout, ltile), lambda i, j: (i, 0, j)),    # y1 tile
                pl.BlockSpec((1, 1, cout, 2), lambda i, j: (i, j, 0, 0)),  # bn1 partials
            ),
        ),
        compiler_params=pltpu.CompilerParams(
            dimension_semantics=("parallel", "parallel")),
    )(xc, xc, w1c, b1, m1)

    sc1, sh1 = _bn_affine(st1, params["g1"], params["be1"])

    # ---------------- stage 2 ----------------------------------------------------
    z, st2 = pl.pallas_call(
        functools.partial(_stage2_kernel, wpc=wpc, ltile=ltile),
        out_shape=(jax.ShapeDtypeStruct((n, cout, l_out), f32),
                   jax.ShapeDtypeStruct((n, t_out, cout, 2), f32)),
        grid_spec=pltpu.PrefetchScalarGridSpec(
            num_scalar_prefetch=0,
            grid=(n, t_out),
            in_specs=[
                pl.BlockSpec((1, cout, ltile), lambda i, j: (i, 0, j)),      # y1 tile
                pl.BlockSpec((1, cout, ltile), lambda i, j: (i, 0, j + 1)),  # y1 halo tile
                pl.BlockSpec((cout, 9 * cout), lambda i, j: (0, 0)),         # w2 (im2col)
                pl.BlockSpec((cout, 1), lambda i, j: (0, 0)),                # b2
                pl.BlockSpec((cout, 1), lambda i, j: (0, 0)),                # bn1 scale
                pl.BlockSpec((cout, 1), lambda i, j: (0, 0)),                # bn1 shift
                pl.BlockSpec((1, ltile), lambda i, j: (0, j)),               # mask1 tile
                pl.BlockSpec((1, ltile), lambda i, j: (0, j + 1)),           # mask1 halo
                pl.BlockSpec((1, ltile), lambda i, j: (0, j)),               # bn2 stat mask
            ],
            out_specs=(
                pl.BlockSpec((1, cout, ltile), lambda i, j: (i, 0, j)),      # z tile
                pl.BlockSpec((1, 1, cout, 2), lambda i, j: (i, j, 0, 0)),    # bn2 partials
            ),
        ),
        compiler_params=pltpu.CompilerParams(
            dimension_semantics=("parallel", "parallel")),
    )(y1, y1, w2c, b2, sc1, sh1, m1, m1, m2)

    sc2, sh2 = _bn_affine(st2, params["g2"], params["be2"])

    # ---------------- stage 3 ----------------------------------------------------
    out = pl.pallas_call(
        _stage3_kernel,
        out_shape=jax.ShapeDtypeStruct((n, cout, l_out), f32),
        grid_spec=pltpu.PrefetchScalarGridSpec(
            num_scalar_prefetch=0,
            grid=(n, t_out),
            in_specs=[
                pl.BlockSpec((1, cout, ltile), lambda i, j: (i, 0, j)),   # z tile
                pl.BlockSpec((1, cout, ltile), lambda i, j: (i, 0, j)),   # residual tile
                pl.BlockSpec((cout, 1), lambda i, j: (0, 0)),             # bn2 scale
                pl.BlockSpec((cout, 1), lambda i, j: (0, 0)),             # bn2 shift
            ],
            out_specs=pl.BlockSpec((1, cout, ltile), lambda i, j: (i, 0, j)),
        ),
        compiler_params=pltpu.CompilerParams(
            dimension_semantics=("parallel", "parallel")),
    )(z, xr, sc2, sh2)

    # single slice/reshape at the very end: canvas -> NCHW
    out = out[:, :, :h * wpc].reshape(n, cout, h, wpc)[:, :, :, :w]
    return out


# ----------------------- pure-JAX reference (for self-check) ----------------- #
def _reference(x, params, eps=1e-5):
    f32 = jnp.float32
    x = x.astype(f32)
    dn = ("NCHW", "OIHW", "NCHW")
    hp = jax.lax.Precision.HIGHEST

    def bn(t, g, b):
        mean = jnp.mean(t, axis=(0, 2, 3), keepdims=True)
        var = jnp.mean((t - mean) ** 2, axis=(0, 2, 3), keepdims=True)
        return (t - mean) / jnp.sqrt(var + eps) * g.reshape(1, -1, 1, 1) \
               + b.reshape(1, -1, 1, 1)

    y = jax.lax.conv_general_dilated(x, params["w1"].astype(f32), (1, 1),
                                     ((2, 2), (2, 2)), dimension_numbers=dn,
                                     precision=hp)
    y = y + params["b1"].reshape(1, -1, 1, 1)
    y = jax.lax.reduce_window(y, -jnp.inf, jax.lax.max,
                              (1, 1, 3, 3), (1, 1, 1, 1), "VALID")
    y = jnp.maximum(bn(y, params["g1"], params["be1"]), 0.0)
    z = jax.lax.conv_general_dilated(y, params["w2"].astype(f32), (1, 1),
                                     ((1, 1), (1, 1)), dimension_numbers=dn,
                                     precision=hp)
    z = z + params["b2"].reshape(1, -1, 1, 1)
    z = bn(z, params["g2"], params["be2"]) + x
    return jnp.maximum(z, 0.0)


# ----------------------------------- main ----------------------------------- #
if __name__ == "__main__":
    N, C, H, W = 2, 8, 16, 16            # in_f == out_f so the identity residual adds
    key = jax.random.PRNGKey(0)
    ks = jax.random.split(key, 5)
    x = jax.random.normal(ks[0], (N, C, H, W), jnp.float32)

    params = {
        # conv weights in PyTorch Conv2d layout (Cout, Cin, kh, kw)
        "w1": 0.1 * jax.random.normal(ks[1], (C, C, 3, 3), jnp.float32),
        "b1": 0.1 * jax.random.normal(ks[2], (C,), jnp.float32),
        "w2": 0.1 * jax.random.normal(ks[3], (C, C, 3, 3), jnp.float32),
        "b2": 0.1 * jax.random.normal(ks[4], (C,), jnp.float32),
        "g1": jnp.ones((C,), jnp.float32),   # BatchNorm affine defaults
        "be1": jnp.zeros((C,), jnp.float32),
        "g2": jnp.ones((C,), jnp.float32),
        "be2": jnp.zeros((C,), jnp.float32),
    }

    y = jax.jit(block8_forward)(x, params)
    jax.block_until_ready(y)
    assert y.shape == (N, C, H, W), y.shape
    assert bool(jnp.all(jnp.isfinite(y)))

    ref = _reference(x, params)
    err = float(jnp.max(jnp.abs(y - ref)))
    assert err < 3e-2, f"max abs err vs reference: {err}"
    print("KERNEL_OK")
</pallas_src>

<mosaic_0001>
module attributes {stable_mosaic.version = 11 : i64} {
  func.func @_stage1_kernel(%arg0: i32, %arg1: i32, %arg2: memref<1x8x384xf32, #tpu.memory_space<vmem>>, %arg3: memref<1x8x384xf32, #tpu.memory_space<vmem>>, %arg4: memref<8x72xf32, #tpu.memory_space<vmem>>, %arg5: memref<8x1xf32, #tpu.memory_space<vmem>>, %arg6: memref<1x384xf32, #tpu.memory_space<vmem>>, %arg7: memref<1x8x384xf32, #tpu.memory_space<vmem>>, %arg8: memref<1x1x8x2xf32, #tpu.memory_space<vmem>>) attributes {dimension_semantics = [#tpu.dimension_semantics<parallel>, #tpu.dimension_semantics<parallel>], iteration_bounds = array<i64: 2, 2>, scalar_prefetch = 0 : i64, scratch_operands = 0 : i64, tpu.core_type = #tpu.core_type<tc>, window_params = [{transform_indices = @transform_0, window_bounds = array<i64: 1, 8, 384>}, {transform_indices = @transform_1, window_bounds = array<i64: 1, 8, 384>}, {pipeline_mode = #tpu.pipeline_mode<synchronous>, transform_indices = @transform_2, window_bounds = array<i64: 8, 72>}, {pipeline_mode = #tpu.pipeline_mode<synchronous>, transform_indices = @transform_3, window_bounds = array<i64: 8, 1>}, {transform_indices = @transform_4, window_bounds = array<i64: 1, 384>}, {transform_indices = @transform_5, window_bounds = array<i64: 1, 8, 384>}, {transform_indices = @transform_6, window_bounds = array<i64: 1, 1, 8, 2>}]} {
    %c0 = arith.constant 0 : index
    %c0_0 = arith.constant 0 : index
    %c0_1 = arith.constant 0 : index
    %0 = vector.load %arg2[%c0, %c0_0, %c0_1] : memref<1x8x384xf32, #tpu.memory_space<vmem>>, vector<1x8x384xf32>
    %1 = vector.shape_cast %0 : vector<1x8x384xf32> to vector<8x384xf32>
    %c0_2 = arith.constant 0 : index
    %c0_3 = arith.constant 0 : index
    %c0_4 = arith.constant 0 : index
    %2 = vector.load %arg3[%c0_2, %c0_3, %c0_4] : memref<1x8x384xf32, #tpu.memory_space<vmem>>, vector<1x8x384xf32>
    %3 = vector.shape_cast %2 : vector<1x8x384xf32> to vector<8x384xf32>
    %4 = tpu.concatenate %1, %3 in 1 : vector<8x384xf32>, vector<8x384xf32> -> vector<8x768xf32>
    %5 = vector.extract_strided_slice %4 {offsets = [0, 0], sizes = [8, 428], strides = [1, 1]} : vector<8x768xf32> to vector<8x428xf32>
    %6 = vector.extract_strided_slice %4 {offsets = [0, 1], sizes = [8, 428], strides = [1, 1]} : vector<8x768xf32> to vector<8x428xf32>
    %7 = vector.extract_strided_slice %4 {offsets = [0, 2], sizes = [8, 428], strides = [1, 1]} : vector<8x768xf32> to vector<8x428xf32>
    %8 = vector.extract_strided_slice %4 {offsets = [0, 21], sizes = [8, 428], strides = [1, 1]} : vector<8x768xf32> to vector<8x428xf32>
    %9 = vector.extract_strided_slice %4 {offsets = [0, 22], sizes = [8, 428], strides = [1, 1]} : vector<8x768xf32> to vector<8x428xf32>
    %10 = vector.extract_strided_slice %4 {offsets = [0, 23], sizes = [8, 428], strides = [1, 1]} : vector<8x768xf32> to vector<8x428xf32>
    %11 = vector.extract_strided_slice %4 {offsets = [0, 42], sizes = [8, 428], strides = [1, 1]} : vector<8x768xf32> to vector<8x428xf32>
    %12 = vector.extract_strided_slice %4 {offsets = [0, 43], sizes = [8, 428], strides = [1, 1]} : vector<8x768xf32> to vector<8x428xf32>
    %13 = vector.extract_strided_slice %4 {offsets = [0, 44], sizes = [8, 428], strides = [1, 1]} : vector<8x768xf32> to vector<8x428xf32>
    %14 = tpu.concatenate %5, %6, %7, %8, %9, %10, %11, %12, %13 in 0 : vector<8x428xf32>, vector<8x428xf32>, vector<8x428xf32>, vector<8x428xf32>, vector<8x428xf32>, vector<8x428xf32>, vector<8x428xf32>, vector<8x428xf32>, vector<8x428xf32> -> vector<72x428xf32>
    %c0_5 = arith.constant 0 : index
    %c0_6 = arith.constant 0 : index
    %15 = vector.load %arg4[%c0_5, %c0_6] : memref<8x72xf32, #tpu.memory_space<vmem>>, vector<8x72xf32>
    %cst = arith.constant dense<0.000000e+00> : vector<8x428xf32>
    %16 = tpu.matmul %15, %14, %cst {dimension_numbers = #tpu.dot_dimension_numbers<[1], [0], [0], [1], [0, 0, 1, 1], [], []>} : vector<8x72xf32>, vector<72x428xf32>, vector<8x428xf32> -> vector<8x428xf32>
    %17 = vector.extract_strided_slice %16 {offsets = [0, 0], sizes = [8, 384], strides = [1, 1]} : vector<8x428xf32> to vector<8x384xf32>
    %18 = vector.extract_strided_slice %16 {offsets = [0, 1], sizes = [8, 384], strides = [1, 1]} : vector<8x428xf32> to vector<8x384xf32>
    %19 = arith.maximumf %17, %18 : vector<8x384xf32>
    %20 = vector.extract_strided_slice %16 {offsets = [0, 2], sizes = [8, 384], strides = [1, 1]} : vector<8x428xf32> to vector<8x384xf32>
    %21 = arith.maximumf %19, %20 : vector<8x384xf32>
    %22 = vector.extract_strided_slice %16 {offsets = [0, 21], sizes = [8, 384], strides = [1, 1]} : vector<8x428xf32> to vector<8x384xf32>
    %23 = arith.maximumf %21, %22 : vector<8x384xf32>
    %24 = vector.extract_strided_slice %16 {offsets = [0, 22], sizes = [8, 384], strides = [1, 1]} : vector<8x428xf32> to vector<8x384xf32>
    %25 = arith.maximumf %23, %24 : vector<8x384xf32>
    %26 = vector.extract_strided_slice %16 {offsets = [0, 23], sizes = [8, 384], strides = [1, 1]} : vector<8x428xf32> to vector<8x384xf32>
    %27 = arith.maximumf %25, %26 : vector<8x384xf32>
    %28 = vector.extract_strided_slice %16 {offsets = [0, 42], sizes = [8, 384], strides = [1, 1]} : vector<8x428xf32> to vector<8x384xf32>
    %29 = arith.maximumf %27, %28 : vector<8x384xf32>
    %30 = vector.extract_strided_slice %16 {offsets = [0, 43], sizes = [8, 384], strides = [1, 1]} : vector<8x428xf32> to vector<8x384xf32>
    %31 = arith.maximumf %29, %30 : vector<8x384xf32>
    %32 = vector.extract_strided_slice %16 {offsets = [0, 44], sizes = [8, 384], strides = [1, 1]} : vector<8x428xf32> to vector<8x384xf32>
    %33 = arith.maximumf %31, %32 : vector<8x384xf32>
    %c0_7 = arith.constant 0 : index
    %c0_8 = arith.constant 0 : index
    %34 = vector.load %arg5[%c0_7, %c0_8] : memref<8x1xf32, #tpu.memory_space<vmem>>, vector<8x1xf32>
    %35 = vector.broadcast %34 : vector<8x1xf32> to vector<8x384xf32>
    %36 = arith.addf %33, %35 : vector<8x384xf32>
    %c0_9 = arith.constant 0 : index
    %c0_10 = arith.constant 0 : index
    %c0_11 = arith.constant 0 : index
    %37 = vector.load %arg7[%c0_9, %c0_10, %c0_11] : memref<1x8x384xf32, #tpu.memory_space<vmem>>, vector<1x8x384xf32>
    %38 = vector.shape_cast %37 : vector<1x8x384xf32> to vector<8x384xf32>
    %39 = vector.shape_cast %36 : vector<8x384xf32> to vector<1x8x384xf32>
    tpu.vector_store %arg7[%c0_9, %c0_10, %c0_11], %39 {strides = array<i32>} : memref<1x8x384xf32, #tpu.memory_space<vmem>>, vector<1x8x384xf32>,
    %c0_12 = arith.constant 0 : index
    %c0_13 = arith.constant 0 : index
    %40 = vector.load %arg6[%c0_12, %c0_13] : memref<1x384xf32, #tpu.memory_space<vmem>>, vector<1x384xf32>
    %cst_14 = arith.constant 0.000000e+00 : f32
    %41 = vector.broadcast %cst_14 : f32 to vector<1x384xf32>
    %42 = arith.cmpf ogt, %40, %41 : vector<1x384xf32>
    %cst_15 = arith.constant 0.000000e+00 : f32
    %43 = vector.shape_cast %42 : vector<1x384xi1> to vector<1x384xi1>
    %44 = vector.broadcast %43 : vector<1x384xi1> to vector<8x384xi1>
    %45 = vector.broadcast %cst_15 : f32 to vector<8x384xf32>
    %46 = arith.select %44, %36, %45 : vector<8x384xi1>, vector<8x384xf32>
    %cst_16 = arith.constant dense<0.000000e+00> : vector<8xf32>
    %47 = vector.multi_reduction <add>, %46, %cst_16 [1] : vector<8x384xf32> to vector<8xf32>
    %48 = vector.shape_cast %47 : vector<8xf32> to vector<8x1xf32>
    %49 = arith.mulf %46, %46 : vector<8x384xf32>
    %cst_17 = arith.constant dense<0.000000e+00> : vector<8xf32>
    %50 = vector.multi_reduction <add>, %49, %cst_17 [1] : vector<8x384xf32> to vector<8xf32>
    %51 = vector.shape_cast %50 : vector<8xf32> to vector<8x1xf32>
    %52 = tpu.concatenate %48, %51 in 1 : vector<8x1xf32>, vector<8x1xf32> -> vector<8x2xf32>
    %c0_18 = arith.constant 0 : index
    %c0_19 = arith.constant 0 : index
    %c0_20 = arith.constant 0 : index
    %c0_21 = arith.constant 0 : index
    %53 = vector.load %arg8[%c0_18, %c0_19, %c0_20, %c0_21] : memref<1x1x8x2xf32, #tpu.memory_space<vmem>>, vector<1x1x8x2xf32>
    %54 = vector.shape_cast %53 : vector<1x1x8x2xf32> to vector<8x2xf32>
    %55 = vector.shape_cast %52 : vector<8x2xf32> to vector<1x1x8x2xf32>
    tpu.vector_store %arg8[%c0_18, %c0_19, %c0_20, %c0_21], %55 {strides = array<i32>} : memref<1x1x8x2xf32, #tpu.memory_space<vmem>>, vector<1x1x8x2xf32>,
    return
  }
  func.func @transform_0(%arg0: i32, %arg1: i32) -> (i32, i32, i32) {
    %c0_i32 = arith.constant 0 : i32
    %c0_i32_0 = arith.constant 0 : i32
    return %arg0, %c0_i32, %arg1 : i32, i32, i32
  }
  func.func @transform_1(%arg0: i32, %arg1: i32) -> (i32, i32, i32) {
    %c1_i32 = arith.constant 1 : i32
    %0 = arith.addi %arg1, %c1_i32 : i32
    %c0_i32 = arith.constant 0 : i32
    %c0_i32_0 = arith.constant 0 : i32
    return %arg0, %c0_i32, %0 : i32, i32, i32
  }
  func.func @transform_2(%arg0: i32, %arg1: i32) -> (i32, i32) {
    %c0_i32 = arith.constant 0 : i32
    %c0_i32_0 = arith.constant 0 : i32
    %c0_i32_1 = arith.constant 0 : i32
    return %c0_i32, %c0_i32_0 : i32, i32
  }
  func.func @transform_3(%arg0: i32, %arg1: i32) -> (i32, i32) {
    %c0_i32 = arith.constant 0 : i32
    %c0_i32_0 = arith.constant 0 : i32
    %c0_i32_1 = arith.constant 0 : i32
    return %c0_i32, %c0_i32_0 : i32, i32
  }
  func.func @transform_4(%arg0: i32, %arg1: i32) -> (i32, i32) {
    %c0_i32 = arith.constant 0 : i32
    %c0_i32_0 = arith.constant 0 : i32
    return %c0_i32, %arg1 : i32, i32
  }
  func.func @transform_5(%arg0: i32, %arg1: i32) -> (i32, i32, i32) {
    %c0_i32 = arith.constant 0 : i32
    %c0_i32_0 = arith.constant 0 : i32
    return %arg0, %c0_i32, %arg1 : i32, i32, i32
  }
  func.func @transform_6(%arg0: i32, %arg1: i32) -> (i32, i32, i32, i32) {
    %c0_i32 = arith.constant 0 : i32
    %c0_i32_0 = arith.constant 0 : i32
    %c0_i32_1 = arith.constant 0 : i32
    return %arg0, %arg1, %c0_i32, %c0_i32_0 : i32, i32, i32, i32
  }
}

module attributes {stable_mosaic.version = 11 : i64} {
  func.func @_stage2_kernel(%arg0: i32, %arg1: i32, %arg2: memref<1x8x384xf32, #tpu.memory_space<vmem>>, %arg3: memref<1x8x384xf32, #tpu.memory_space<vmem>>, %arg4: memref<8x72xf32, #tpu.memory_space<vmem>>, %arg5: memref<8x1xf32, #tpu.memory_space<vmem>>, %arg6: memref<8x1xf32, #tpu.memory_space<vmem>>, %arg7: memref<8x1xf32, #tpu.memory_space<vmem>>, %arg8: memref<1x384xf32, #tpu.memory_space<vmem>>, %arg9: memref<1x384xf32, #tpu.memory_space<vmem>>, %arg10: memref<1x384xf32, #tpu.memory_space<vmem>>, %arg11: memref<1x8x384xf32, #tpu.memory_space<vmem>>, %arg12: memref<1x1x8x2xf32, #tpu.memory_space<vmem>>) attributes {dimension_semantics = [#tpu.dimension_semantics<parallel>, #tpu.dimension_semantics<parallel>], iteration_bounds = array<i64: 2, 1>, scalar_prefetch = 0 : i64, scratch_operands = 0 : i64, tpu.core_type = #tpu.core_type<tc>, window_params = [{transform_indices = @transform_0, window_bounds = array<i64: 1, 8, 384>}, {transform_indices = @transform_1, window_bounds = array<i64: 1, 8, 384>}, {pipeline_mode = #tpu.pipeline_mode<synchronous>, transform_indices = @transform_2, window_bounds = array<i64: 8, 72>}, {pipeline_mode = #tpu.pipeline_mode<synchronous>, transform_indices = @transform_3, window_bounds = array<i64: 8, 1>}, {pipeline_mode = #tpu.pipeline_mode<synchronous>, transform_indices = @transform_4, window_bounds = array<i64: 8, 1>}, {pipeline_mode = #tpu.pipeline_mode<synchronous>, transform_indices = @transform_5, window_bounds = array<i64: 8, 1>}, {transform_indices = @transform_6, window_bounds = array<i64: 1, 384>}, {transform_indices = @transform_7, window_bounds = array<i64: 1, 384>}, {transform_indices = @transform_8, window_bounds = array<i64: 1, 384>}, {transform_indices = @transform_9, window_bounds = array<i64: 1, 8, 384>}, {transform_indices = @transform_10, window_bounds = array<i64: 1, 1, 8, 2>}]} {
    %c0 = arith.constant 0 : index
    %c0_0 = arith.constant 0 : index
    %c0_1 = arith.constant 0 : index
    %0 = vector.load %arg2[%c0, %c0_0, %c0_1] : memref<1x8x384xf32, #tpu.memory_space<vmem>>, vector<1x8x384xf32>
    %1 = vector.shape_cast %0 : vector<1x8x384xf32> to vector<8x384xf32>
    %c0_2 = arith.constant 0 : index
    %c0_3 = arith.constant 0 : index
    %c0_4 = arith.constant 0 : index
    %2 = vector.load %arg3[%c0_2, %c0_3, %c0_4] : memref<1x8x384xf32, #tpu.memory_space<vmem>>, vector<1x8x384xf32>
    %3 = vector.shape_cast %2 : vector<1x8x384xf32> to vector<8x384xf32>
    %4 = tpu.concatenate %1, %3 in 1 : vector<8x384xf32>, vector<8x384xf32> -> vector<8x768xf32>
    %5 = vector.extract_strided_slice %4 {offsets = [0, 0], sizes = [8, 428], strides = [1, 1]} : vector<8x768xf32> to vector<8x428xf32>
    %c0_5 = arith.constant 0 : index
    %c0_6 = arith.constant 0 : index
    %6 = vector.load %arg8[%c0_5, %c0_6] : memref<1x384xf32, #tpu.memory_space<vmem>>, vector<1x384xf32>
    %c0_7 = arith.constant 0 : index
    %c0_8 = arith.constant 0 : index
    %7 = vector.load %arg9[%c0_7, %c0_8] : memref<1x384xf32, #tpu.memory_space<vmem>>, vector<1x384xf32>
    %8 = tpu.concatenate %6, %7 in 1 : vector<1x384xf32>, vector<1x384xf32> -> vector<1x768xf32>
    %9 = vector.extract_strided_slice %8 {offsets = [0, 0], sizes = [1, 428], strides = [1, 1]} : vector<1x768xf32> to vector<1x428xf32>
    %cst = arith.constant 0.000000e+00 : f32
    %10 = vector.broadcast %cst : f32 to vector<1x428xf32>
    %11 = arith.cmpf ogt, %9, %10 : vector<1x428xf32>
    %c0_9 = arith.constant 0 : index
    %c0_10 = arith.constant 0 : index
    %12 = vector.load %arg6[%c0_9, %c0_10] : memref<8x1xf32, #tpu.memory_space<vmem>>, vector<8x1xf32>
    %13 = vector.broadcast %12 : vector<8x1xf32> to vector<8x428xf32>
    %14 = arith.mulf %13, %5 : vector<8x428xf32>
    %c0_11 = arith.constant 0 : index
    %c0_12 = arith.constant 0 : index
    %15 = vector.load %arg7[%c0_11, %c0_12] : memref<8x1xf32, #tpu.memory_space<vmem>>, vector<8x1xf32>
    %16 = vector.broadcast %15 : vector<8x1xf32> to vector<8x428xf32>
    %17 = arith.addf %14, %16 : vector<8x428xf32>
    %cst_13 = arith.constant 0.000000e+00 : f32
    %18 = vector.broadcast %cst_13 : f32 to vector<8x428xf32>
    %19 = arith.maximumf %17, %18 : vector<8x428xf32>
    %cst_14 = arith.constant 0.000000e+00 : f32
    %20 = vector.shape_cast %11 : vector<1x428xi1> to vector<1x428xi1>
    %21 = vector.broadcast %20 : vector<1x428xi1> to vector<8x428xi1>
    %22 = vector.broadcast %cst_14 : f32 to vector<8x428xf32>
    %23 = arith.select %21, %19, %22 : vector<8x428xi1>, vector<8x428xf32>
    %24 = vector.extract_strided_slice %23 {offsets = [0, 0], sizes = [8, 384], strides = [1, 1]} : vector<8x428xf32> to vector<8x384xf32>
    %25 = vector.extract_strided_slice %23 {offsets = [0, 1], sizes = [8, 384], strides = [1, 1]} : vector<8x428xf32> to vector<8x384xf32>
    %26 = vector.extract_strided_slice %23 {offsets = [0, 2], sizes = [8, 384], strides = [1, 1]} : vector<8x428xf32> to vector<8x384xf32>
    %27 = vector.extract_strided_slice %23 {offsets = [0, 21], sizes = [8, 384], strides = [1, 1]} : vector<8x428xf32> to vector<8x384xf32>
    %28 = vector.extract_strided_slice %23 {offsets = [0, 22], sizes = [8, 384], strides = [1, 1]} : vector<8x428xf32> to vector<8x384xf32>
    %29 = vector.extract_strided_slice %23 {offsets = [0, 23], sizes = [8, 384], strides = [1, 1]} : vector<8x428xf32> to vector<8x384xf32>
    %30 = vector.extract_strided_slice %23 {offsets = [0, 42], sizes = [8, 384], strides = [1, 1]} : vector<8x428xf32> to vector<8x384xf32>
    %31 = vector.extract_strided_slice %23 {offsets = [0, 43], sizes = [8, 384], strides = [1, 1]} : vector<8x428xf32> to vector<8x384xf32>
    %32 = vector.extract_strided_slice %23 {offsets = [0, 44], sizes = [8, 384], strides = [1, 1]} : vector<8x428xf32> to vector<8x384xf32>
    %33 = tpu.concatenate %24, %25, %26, %27, %28, %29, %30, %31, %32 in 0 : vector<8x384xf32>, vector<8x384xf32>, vector<8x384xf32>, vector<8x384xf32>, vector<8x384xf32>, vector<8x384xf32>, vector<8x384xf32>, vector<8x384xf32>, vector<8x384xf32> -> vector<72x384xf32>
    %c0_15 = arith.constant 0 : index
    %c0_16 = arith.constant 0 : index
    %34 = vector.load %arg4[%c0_15, %c0_16] : memref<8x72xf32, #tpu.memory_space<vmem>>, vector<8x72xf32>
    %cst_17 = arith.constant dense<0.000000e+00> : vector<8x384xf32>
    %35 = tpu.matmul %34, %33, %cst_17 {dimension_numbers = #tpu.dot_dimension_numbers<[1], [0], [0], [1], [0, 0, 1, 1], [], []>} : vector<8x72xf32>, vector<72x384xf32>, vector<8x384xf32> -> vector<8x384xf32>
    %c0_18 = arith.constant 0 : index
    %c0_19 = arith.constant 0 : index
    %36 = vector.load %arg5[%c0_18, %c0_19] : memref<8x1xf32, #tpu.memory_space<vmem>>, vector<8x1xf32>
    %37 = vector.broadcast %36 : vector<8x1xf32> to vector<8x384xf32>
    %38 = arith.addf %35, %37 : vector<8x384xf32>
    %c0_20 = arith.constant 0 : index
    %c0_21 = arith.constant 0 : index
    %c0_22 = arith.constant 0 : index
    %39 = vector.load %arg11[%c0_20, %c0_21, %c0_22] : memref<1x8x384xf32, #tpu.memory_space<vmem>>, vector<1x8x384xf32>
    %40 = vector.shape_cast %39 : vector<1x8x384xf32> to vector<8x384xf32>
    %41 = vector.shape_cast %38 : vector<8x384xf32> to vector<1x8x384xf32>
    tpu.vector_store %arg11[%c0_20, %c0_21, %c0_22], %41 {strides = array<i32>} : memref<1x8x384xf32, #tpu.memory_space<vmem>>, vector<1x8x384xf32>,
    %c0_23 = arith.constant 0 : index
    %c0_24 = arith.constant 0 : index
    %42 = vector.load %arg10[%c0_23, %c0_24] : memref<1x384xf32, #tpu.memory_space<vmem>>, vector<1x384xf32>
    %cst_25 = arith.constant 0.000000e+00 : f32
    %43 = vector.broadcast %cst_25 : f32 to vector<1x384xf32>
    %44 = arith.cmpf ogt, %42, %43 : vector<1x384xf32>
    %cst_26 = arith.constant 0.000000e+00 : f32
    %45 = vector.shape_cast %44 : vector<1x384xi1> to vector<1x384xi1>
    %46 = vector.broadcast %45 : vector<1x384xi1> to vector<8x384xi1>
    %47 = vector.broadcast %cst_26 : f32 to vector<8x384xf32>
    %48 = arith.select %46, %38, %47 : vector<8x384xi1>, vector<8x384xf32>
    %cst_27 = arith.constant dense<0.000000e+00> : vector<8xf32>
    %49 = vector.multi_reduction <add>, %48, %cst_27 [1] : vector<8x384xf32> to vector<8xf32>
    %50 = vector.shape_cast %49 : vector<8xf32> to vector<8x1xf32>
    %51 = arith.mulf %48, %48 : vector<8x384xf32>
    %cst_28 = arith.constant dense<0.000000e+00> : vector<8xf32>
    %52 = vector.multi_reduction <add>, %51, %cst_28 [1] : vector<8x384xf32> to vector<8xf32>
    %53 = vector.shape_cast %52 : vector<8xf32> to vector<8x1xf32>
    %54 = tpu.concatenate %50, %53 in 1 : vector<8x1xf32>, vector<8x1xf32> -> vector<8x2xf32>
    %c0_29 = arith.constant 0 : index
    %c0_30 = arith.constant 0 : index
    %c0_31 = arith.constant 0 : index
    %c0_32 = arith.constant 0 : index
    %55 = vector.load %arg12[%c0_29, %c0_30, %c0_31, %c0_32] : memref<1x1x8x2xf32, #tpu.memory_space<vmem>>, vector<1x1x8x2xf32>
    %56 = vector.shape_cast %55 : vector<1x1x8x2xf32> to vector<8x2xf32>
    %57 = vector.shape_cast %54 : vector<8x2xf32> to vector<1x1x8x2xf32>
    tpu.vector_store %arg12[%c0_29, %c0_30, %c0_31, %c0_32], %57 {strides = array<i32>} : memref<1x1x8x2xf32, #tpu.memory_space<vmem>>, vector<1x1x8x2xf32>,
    return
  }
  func.func @transform_0(%arg0: i32, %arg1: i32) -> (i32, i32, i32) {
    %c0_i32 = arith.constant 0 : i32
    %c0_i32_0 = arith.constant 0 : i32
    return %arg0, %c0_i32, %arg1 : i32, i32, i32
  }
  func.func @transform_1(%arg0: i32, %arg1: i32) -> (i32, i32, i32) {
    %c1_i32 = arith.constant 1 : i32
    %0 = arith.addi %arg1, %c1_i32 : i32
    %c0_i32 = arith.constant 0 : i32
    %c0_i32_0 = arith.constant 0 : i32
    return %arg0, %c0_i32, %0 : i32, i32, i32
  }
  func.func @transform_2(%arg0: i32, %arg1: i32) -> (i32, i32) {
    %c0_i32 = arith.constant 0 : i32
    %c0_i32_0 = arith.constant 0 : i32
    %c0_i32_1 = arith.constant 0 : i32
    return %c0_i32, %c0_i32_0 : i32, i32
  }
  func.func @transform_3(%arg0: i32, %arg1: i32) -> (i32, i32) {
    %c0_i32 = arith.constant 0 : i32
    %c0_i32_0 = arith.constant 0 : i32
    %c0_i32_1 = arith.constant 0 : i32
    return %c0_i32, %c0_i32_0 : i32, i32
  }
  func.func @transform_4(%arg0: i32, %arg1: i32) -> (i32, i32) {
    %c0_i32 = arith.constant 0 : i32
    %c0_i32_0 = arith.constant 0 : i32
    %c0_i32_1 = arith.constant 0 : i32
    return %c0_i32, %c0_i32_0 : i32, i32
  }
  func.func @transform_5(%arg0: i32, %arg1: i32) -> (i32, i32) {
    %c0_i32 = arith.constant 0 : i32
    %c0_i32_0 = arith.constant 0 : i32
    %c0_i32_1 = arith.constant 0 : i32
    return %c0_i32, %c0_i32_0 : i32, i32
  }
  func.func @transform_6(%arg0: i32, %arg1: i32) -> (i32, i32) {
    %c0_i32 = arith.constant 0 : i32
    %c0_i32_0 = arith.constant 0 : i32
    return %c0_i32, %arg1 : i32, i32
  }
  func.func @transform_7(%arg0: i32, %arg1: i32) -> (i32, i32) {
    %c1_i32 = arith.constant 1 : i32
    %0 = arith.addi %arg1, %c1_i32 : i32
    %c0_i32 = arith.constant 0 : i32
    %c0_i32_0 = arith.constant 0 : i32
    return %c0_i32, %0 : i32, i32
  }
  func.func @transform_8(%arg0: i32, %arg1: i32) -> (i32, i32) {
    %c0_i32 = arith.constant 0 : i32
    %c0_i32_0 = arith.constant 0 : i32
    return %c0_i32, %arg1 : i32, i32
  }
  func.func @transform_9(%arg0: i32, %arg1: i32) -> (i32, i32, i32) {
    %c0_i32 = arith.constant 0 : i32
    %c0_i32_0 = arith.constant 0 : i32
    return %arg0, %c0_i32, %arg1 : i32, i32, i32
  }
  func.func @transform_10(%arg0: i32, %arg1: i32) -> (i32, i32, i32, i32) {
    %c0_i32 = arith.constant 0 : i32
    %c0_i32_0 = arith.constant 0 : i32
    %c0_i32_1 = arith.constant 0 : i32
    return %arg0, %arg1, %c0_i32, %c0_i32_0 : i32, i32, i32, i32
  }
}

module attributes {stable_mosaic.version = 11 : i64} {
  func.func @_stage3_kernel(%arg0: i32, %arg1: i32, %arg2: memref<1x8x384xf32, #tpu.memory_space<vmem>>, %arg3: memref<1x8x384xf32, #tpu.memory_space<vmem>>, %arg4: memref<8x1xf32, #tpu.memory_space<vmem>>, %arg5: memref<8x1xf32, #tpu.memory_space<vmem>>, %arg6: memref<1x8x384xf32, #tpu.memory_space<vmem>>) attributes {dimension_semantics = [#tpu.dimension_semantics<parallel>, #tpu.dimension_semantics<parallel>], iteration_bounds = array<i64: 2, 1>, scalar_prefetch = 0 : i64, scratch_operands = 0 : i64, tpu.core_type = #tpu.core_type<tc>, window_params = [{transform_indices = @transform_0, window_bounds = array<i64: 1, 8, 384>}, {transform_indices = @transform_1, window_bounds = array<i64: 1, 8, 384>}, {pipeline_mode = #tpu.pipeline_mode<synchronous>, transform_indices = @transform_2, window_bounds = array<i64: 8, 1>}, {pipeline_mode = #tpu.pipeline_mode<synchronous>, transform_indices = @transform_3, window_bounds = array<i64: 8, 1>}, {transform_indices = @transform_4, window_bounds = array<i64: 1, 8, 384>}]} {
    %c0 = arith.constant 0 : index
    %c0_0 = arith.constant 0 : index
    %0 = vector.load %arg4[%c0, %c0_0] : memref<8x1xf32, #tpu.memory_space<vmem>>, vector<8x1xf32>
    %c0_1 = arith.constant 0 : index
    %c0_2 = arith.constant 0 : index
    %c0_3 = arith.constant 0 : index
    %1 = vector.load %arg2[%c0_1, %c0_2, %c0_3] : memref<1x8x384xf32, #tpu.memory_space<vmem>>, vector<1x8x384xf32>
    %2 = vector.shape_cast %1 : vector<1x8x384xf32> to vector<8x384xf32>
    %3 = vector.broadcast %0 : vector<8x1xf32> to vector<8x384xf32>
    %4 = arith.mulf %3, %2 : vector<8x384xf32>
    %c0_4 = arith.constant 0 : index
    %c0_5 = arith.constant 0 : index
    %5 = vector.load %arg5[%c0_4, %c0_5] : memref<8x1xf32, #tpu.memory_space<vmem>>, vector<8x1xf32>
    %6 = vector.broadcast %5 : vector<8x1xf32> to vector<8x384xf32>
    %7 = arith.addf %4, %6 : vector<8x384xf32>
    %c0_6 = arith.constant 0 : index
    %c0_7 = arith.constant 0 : index
    %c0_8 = arith.constant 0 : index
    %8 = vector.load %arg3[%c0_6, %c0_7, %c0_8] : memref<1x8x384xf32, #tpu.memory_space<vmem>>, vector<1x8x384xf32>
    %9 = vector.shape_cast %8 : vector<1x8x384xf32> to vector<8x384xf32>
    %10 = arith.addf %7, %9 : vector<8x384xf32>
    %cst = arith.constant 0.000000e+00 : f32
    %11 = vector.broadcast %cst : f32 to vector<8x384xf32>
    %12 = arith.maximumf %10, %11 : vector<8x384xf32>
    %c0_9 = arith.constant 0 : index
    %c0_10 = arith.constant 0 : index
    %c0_11 = arith.constant 0 : index
    %13 = vector.load %arg6[%c0_9, %c0_10, %c0_11] : memref<1x8x384xf32, #tpu.memory_space<vmem>>, vector<1x8x384xf32>
    %14 = vector.shape_cast %13 : vector<1x8x384xf32> to vector<8x384xf32>
    %15 = vector.shape_cast %12 : vector<8x384xf32> to vector<1x8x384xf32>
    tpu.vector_store %arg6[%c0_9, %c0_10, %c0_11], %15 {strides = array<i32>} : memref<1x8x384xf32, #tpu.memory_space<vmem>>, vector<1x8x384xf32>,
    return
  }
  func.func @transform_0(%arg0: i32, %arg1: i32) -> (i32, i32, i32) {
    %c0_i32 = arith.constant 0 : i32
    %c0_i32_0 = arith.constant 0 : i32
    return %arg0, %c0_i32, %arg1 : i32, i32, i32
  }
  func.func @transform_1(%arg0: i32, %arg1: i32) -> (i32, i32, i32) {
    %c0_i32 = arith.constant 0 : i32
    %c0_i32_0 = arith.constant 0 : i32
    return %arg0, %c0_i32, %arg1 : i32, i32, i32
  }
  func.func @transform_2(%arg0: i32, %arg1: i32) -> (i32, i32) {
    %c0_i32 = arith.constant 0 : i32
    %c0_i32_0 = arith.constant 0 : i32
    %c0_i32_1 = arith.constant 0 : i32
    return %c0_i32, %c0_i32_0 : i32, i32
  }
  func.func @transform_3(%arg0: i32, %arg1: i32) -> (i32, i32) {
    %c0_i32 = arith.constant 0 : i32
    %c0_i32_0 = arith.constant 0 : i32
    %c0_i32_1 = arith.constant 0 : i32
    return %c0_i32, %c0_i32_0 : i32, i32
  }
  func.func @transform_4(%arg0: i32, %arg1: i32) -> (i32, i32, i32) {
    %c0_i32 = arith.constant 0 : i32
    %c0_i32_0 = arith.constant 0 : i32
    return %arg0, %c0_i32, %arg1 : i32, i32, i32
  }
}

</mosaic_0001>

<bundles_post_ra>
// kernel: block8_forward.3
= control target key start
LH: loop header
LB: loop body
LE: loop exit
PB: predicated region body
PF: predicated region fallthrough
CT: control target
= control target key end

     0   :  { %s1264_s21 = smov 0   ;;  %s1266_s22 = smov 0   ;;  %s1517_s0 = inlined_call_operand.vmem [shape: f32[2,8,1152], index: 0, kind: input, shape index: {}, may-alias: {0,1}]   ;;  %s1518_s1 = inlined_call_operand.vmem [shape: f32[2,8,1152], index: 1, kind: input, shape index: {}, may-alias: {0,1}]   ;;  %s1519_s2 = inlined_call_operand.vmem [shape: f32[8,72], index: 2, kind: input, shape index: {}]   ;;  %s1520_s3 = inlined_call_operand.vmem [shape: f32[8,1], index: 3, kind: input, shape index: {}]   ;;  %s1521_s4 = inlined_call_operand.vmem [shape: f32[1,768], index: 4, kind: input, shape index: {}]   ;;  %s1522_s5 = inlined_call_operand.vmem [shape: f32[2,8,768], index: 5, kind: output, shape index: {0}]   ;;  %s1523_s6 = inlined_call_operand.vmem [shape: f32[2,2,8,2], index: 6, kind: output, shape index: {1}]  }
   0x1   :  { %s1268_s23 = smov 0   ;;  %s1270_s24 = smov 0  }
   0x2   :  { %s1272_s25 = smov 0  }
   0x3 LB: > { %s26_s26 = sadd.s32 1, %s1209_s23  ;;  %s29_s27 = sadd.s32 1, %s1213_s24  ;;  %s1217_s25 = sphi %s1272_s25, %s17_s25   ;;  %s1213_s24 = sphi %s1270_s24, %s1527_s24   ;;  %s1209_s23 = sphi %s1268_s23, %s1526_s23   ;;  %s1205_s22 = sphi %s1266_s22, %s1525_s22   ;;  %s1201_s21 = sphi %s1264_s21, %s1524_s21  }
   0x4   : > { %p27_p0 = scmp.ge.s32.totalorder %s26_s26, 2  ;;  %p1013_p1 = scmp.ge.s32.totalorder %s1217_s25, 1 }
   0x5   : > { %p269_p2 = scmp.lt.s32.totalorder %s1217_s25, 5 }
   0x6   : > { %s1529_s26 = smov (%p27_p0, %s26_s26), 0  ;;  %s1531_s27 = smov (!%p27_p0, %s29_s27), %s1213_s24 }
   0x7   : > { %p270_p3 = pnand %p1013_p1, %p269_p2  ;;  %p31_p4 = scmp.ge.s32.totalorder %s1531_s27, 2 }
   0x8   : > { %s1297_s28 = smul.u32 (!%p270_p3), 3, %s1201_s21  ;;  %p330_p5 = scmp.lt.s32.totalorder (!%p270_p3), %s1205_s22, 1  ;;  %v1226_v6 = vmov (!%p270_p3), 0.0   ;;  %v1227_v7 = vmov (!%p270_p3), 0   ;;  %v797_v10 = vld [vmem:[%s1520_s3] sm:$0xff] (!%p270_p3)  ;;  %vm390_vm1 = vcmask (!%p270_p3), 1039360  }
   0x9   : > { %s1533_s27 = smov (%p31_p4, %s1531_s27), 0  ;;  %273 = sbr.rel (%p270_p3) target bundleno = 721 (0x2d1), region = 40 }
   0xa   : > { %p332_p6 = scmp.lt.s32.totalorder (!%p270_p3), %s1297_s28, 8  ;;  %s339_s30 = sadd.s32 (!%p270_p3), 1, %s1201_s21  ;;  %579 = vmatprep.mubr.f32.mxu0 (!%p270_p3), %v1226_v6  ;;  %650 = vmatprep.mubr.f32.mxu1 (!%p270_p3), %v1226_v6  ;;  %vm406_vm2 = vcmask (!%p270_p3), 1031168   ;;  %vm422_vm3 = vcmask (!%p270_p3), 875520   ;;  %vm438_vm4 = vcmask (!%p270_p3), 867328   ;;  %vm454_vm5 = vcmask (!%p270_p3), 859136  }
   0xb   : > { %s340_s8 = smul.u32 (!%p270_p3), 3, %s339_s30  ;;  %s1219_s15 = smov (!%p270_p3), 126   ;;  %1177 = vset.pattern.permute.xlu1 (!%p270_p3), %v1227_v7  ;;  %1178 = vset.pattern.permute.xlu0 (!%p270_p3), %v1227_v7  ;;  %vm470_vm6 = vcmask (!%p270_p3), 703488   ;;  %vm486_vm7 = vcmask (!%p270_p3), 695296   ;;  %vm502_vm8 = vcmask (!%p270_p3), 687104   ;;  %vm511_vm9 = vcmask (!%p270_p3), 588800  }
   0xc   : > { %s1220_s16 = smov (!%p270_p3), 127   ;;  %s1221_s30 = smov (!%p270_p3), 107   ;;  %vm841_vm13 = vcmask (!%p270_p3), 7168   ;;  %vm843_vm14 = vcmask (!%p270_p3), 15360  }
   0xd   : > { %p343_p7 = scmp.lt.s32.totalorder (!%p270_p3), %s340_s8, 8  ;;  %p352_p8 = scmp.lt.s32.totalorder (!%p270_p3), %s1297_s28, 5 }
   0xe   : > { %p368_p9 = scmp.lt.s32.totalorder (!%p270_p3), %s1201_s21, 1 }
  0x10   : > { %s1535_s22 = smov (!%p330_p5, %s1205_s22), 1  ;;  %s1537_s8 = smov (!%p343_p7, %s340_s8), 8 }
  0x11   : > { %s1055_s29 = smul.u32 9, %s1535_s22  ;;  %s1541_s21 = smov (!%p368_p9, %s1201_s21), 1 }
  0x12   : > { %s333_s7 = scalar_select %p332_p6, %s1297_s28, 8 }
  0x13   : > { %s346_s14 = sadd.s32 %s1055_s29, %s1537_s8  ;;  %s1224_s8 = smov 85  }
  0x14   : > { %s335_s9 = sadd.s32 %s1055_s29, %s333_s7  ;;  %s1015_s17 = sshll.u32 %s346_s14, 3 }
  0x15   : > { %s1014_s10 = sshll.u32 %s335_s9, 3  ;;  %s348_s20 = scalar_lea.vmem %s1518_s1, %s1015_s17 }
  0x16   : > { %s337_s13 = scalar_lea.vmem %s1517_s0, %s1014_s10  ;;  %v377_v4 = vld [vmem:[%s348_s20] sm:$0xff]  ;;  %s1222_s29 = smov 105  }
  0x17   : > { %v1308_v0 = vld [vmem:[%s337_s13 + $0x8] sm:$0xff]  ;;  %v1310_v1 = vld [vmem:[%s337_s13 + $0x10] sm:$0xff]  ;;  %v1316_v3 = vld [vmem:[%s337_s13] sm:$0xff]  ;;  %s1223_s7 = smov 106   ;;  %s1225_s9 = smov 86  }
  0x18   : > { %v1112_v2 = vpack.i.bf16 %v1310_v1, %v1308_v0  ;;  %v1122_v5 = vpack.i.bf16 %v377_v4, %v1316_v3  ;;  %s1539_s28 = smov (!%p352_p8, %s1297_s28), 5  ;;  %s1228_s13 = smov 84  }
  0x19   : > { %s354_s12 = scalar_lea.vmem %s1521_s4, %s1539_s28 }
  0x1a   : > { %1113 = vrot.lane.b32.xlu1 %v1112_v2, %s1219_s15  ;;  %1108 = vrot.lane.b32.xlu0 %v1112_v2, %s1220_s16  ;;  %v809_v8 = vld [vmem:[%s354_s12] sm:$0x7] }
  0x1b   : > { %vm810_vm0 = vcmp.gt.f32.partialorder %v809_v8, 0.0 }
  0x1c   : > { %v1346_v9 = vsel %vm810_vm0, 1, %v1227_v7 }
  0x1e   : > { %1118 = vrot.lane.b32.xlu1 %v1112_v2, %s1221_s30  ;;  %1123 = vrot.lane.b32.xlu0 %v1122_v5, %s1220_s16 }
  0x22   : > { %1138 = vrot.lane.b32.xlu1 %v1122_v5, %s1221_s30  ;;  %1128 = vrot.lane.b32.xlu0 %v1122_v5, %s1219_s15 }
  0x26   : > { %1143 = vrot.lane.b32.xlu1 %v1112_v2, %s1222_s29  ;;  %1133 = vrot.lane.b32.xlu0 %v1112_v2, %s1223_s7 }
  0x2a   : > { %1153 = vrot.lane.b32.xlu1 %v1122_v5, %s1222_s29  ;;  %1148 = vrot.lane.b32.xlu0 %v1122_v5, %s1223_s7 }
  0x2e   : > { %1163 = vrot.lane.b32.xlu1 %v1112_v2, %s1224_s8  ;;  %1158 = vrot.lane.b32.xlu0 %v1112_v2, %s1225_s9 }
  0x32   : > { %1173 = vrot.lane.b32.xlu1 %v1122_v5, %s1224_s8  ;;  %1168 = vrot.lane.b32.xlu0 %v1122_v5, %s1225_s9 }
  0x36   : > { %498 = vrot.lane.b32.xlu1 %v1310_v1, %s1228_s13  ;;  %496 = vrot.lane.b32.xlu0 %v1308_v0, %s1228_s13 }
  0x3a   : > { %500 = vrot.lane.b32.xlu1 %v377_v4, %s1228_s13  ;;  %494 = vrot.lane.b32.xlu0 %v1316_v3, %s1228_s13 }
  0x3e   : > { %800 = vperm.xlu1 %1177, %v797_v10  }
  0x8c   : > { %v1114_v11 = vpop.permute.xlu1 %1113  ;;  %v1109_v12 = vpop.permute.xlu0 %1108 }
  0x8d   : > { %v1111_v13 = vunpack.i.h.bf16 %v1109_v12  ;;  %v1110_v14 = vunpack.i.l.bf16 %v1109_v12  ;;  %v1116_v15 = vunpack.i.h.bf16 %v1114_v11  ;;  %v1115_v16 = vunpack.i.l.bf16 %v1114_v11 }
  0x8f   : > { %v392_v17 = vsel %vm390_vm1, %v1110_v14, %v1111_v13  ;;  %v408_v25 = vsel %vm406_vm2, %v1115_v16, %v1116_v15 }
  0x90   : > { %v1119_v18 = vpop.permute.xlu1 %1118  ;;  %v1023_v19 = vpack.c.bf16 %v392_v17, %v1308_v0  ;;  %v1124_v22 = vpop.permute.xlu0 %1123 }
  0x91   : > { %v1121_v20 = vunpack.i.h.bf16 %v1119_v18  ;;  %v1120_v21 = vunpack.i.l.bf16 %v1119_v18  ;;  %v1126_v23 = vunpack.i.h.bf16 %v1124_v22  ;;  %v1125_v24 = vunpack.i.l.bf16 %v1124_v22 }
  0x92   : > { %1024 = vmatprep.subr.bf16.mxu0 %v1023_v19 }
  0x93   : > { %v424_v26 = vsel %vm422_vm3, %v1120_v21, %v1121_v20  ;;  %v1039_v28 = vpack.c.bf16 %v1126_v23, %v377_v4  ;;  %v391_v29 = vsel %vm390_vm1, %v1125_v24, %v1110_v14  ;;  %v393_v30 = vsel %vm390_vm1, %v1111_v13, %v1126_v23 }
  0x94   : > { %v1139_v27 = vpop.permute.xlu1 %1138  ;;  %v1027_v31 = vpack.c.bf16 %v424_v26, %v408_v25  ;;  %v1129_v34 = vpop.permute.xlu0 %1128  ;;  %v1025_v35 = vpack.c.bf16 %v391_v29, %v1316_v3  ;;  %v1041_v36 = vpack.c.bf16 %v393_v30, %v1310_v1 }
  0x95   : > { %v1141_v32 = vunpack.i.h.bf16 %v1139_v27  ;;  %v1140_v33 = vunpack.i.l.bf16 %v1139_v27  ;;  %v1131_v37 = vunpack.i.h.bf16 %v1129_v34  ;;  %v1130_v38 = vunpack.i.l.bf16 %v1129_v34  ;;  %1040 = vmatprep.subr.bf16.mxu1 %v1039_v28 }
  0x96   : > { %1026 = vmatpush1.bf16.msra.mxu0 %v1025_v35  ;;  %1042 = vmatpush1.bf16.msra.mxu1 %v1041_v36 }
  0x97   : > { %v423_v39 = vsel %vm422_vm3, %v1140_v33, %v1120_v21  ;;  %v425_v40 = vsel %vm422_vm3, %v1121_v20, %v1141_v32  ;;  %v1043_v41 = vpack.c.bf16 %v1141_v32, %v1131_v37  ;;  %1028 = vmatprep.subr.bf16.mxu0 %v1027_v31  ;;  %v407_v43 = vsel %vm406_vm2, %v1130_v38, %v1115_v16  ;;  %v510_v33 = vld [vmem:[%s1519_s2] sm:$0xff] }
  0x98   : > { %v1144_v42 = vpop.permute.xlu1 %1143  ;;  %v409_v44 = vsel %vm406_vm2, %v1116_v15, %v1131_v37  ;;  %v1134_v47 = vpop.permute.xlu0 %1133  ;;  %v1029_v48 = vpack.c.bf16 %v423_v39, %v407_v43 }
  0x99   : > { %v1146_v45 = vunpack.i.h.bf16 %v1144_v42  ;;  %v1145_v46 = vunpack.i.l.bf16 %v1144_v42  ;;  %v1045_v49 = vpack.c.bf16 %v425_v40, %v409_v44  ;;  %v1136_v50 = vunpack.i.h.bf16 %v1134_v47  ;;  %1044 = vmatprep.subr.bf16.mxu1 %v1043_v41 }
  0x9a   : > { %v1135_v51 = vunpack.i.l.bf16 %v1134_v47  ;;  %1030 = vmatpush1.bf16.msra.mxu0 %v1029_v48 }
  0x9b   : > { %1046 = vmatpush1.bf16.msra.mxu1 %v1045_v49  ;;  %v456_v52 = vsel %vm454_vm5, %v1145_v46, %v1146_v45 }
  0x9c   : > { %v1154_v53 = vpop.permute.xlu1 %1153  ;;  %v440_v54 = vsel %vm438_vm4, %v1135_v51, %v1136_v50  ;;  %v1149_v57 = vpop.permute.xlu0 %1148 }
  0x9d   : > { %v1156_v55 = vunpack.i.h.bf16 %v1154_v53  ;;  %v1155_v56 = vunpack.i.l.bf16 %v1154_v53  ;;  %v1031_v58 = vpack.c.bf16 %v456_v52, %v440_v54  ;;  %v1151_v59 = vunpack.i.h.bf16 %v1149_v57 }
  0x9e   : > { %v1150_v60 = vunpack.i.l.bf16 %v1149_v57 }
  0x9f   : > { %1032 = vmatprep.subr.bf16.mxu0 %v1031_v58  ;;  %v455_v61 = vsel %vm454_vm5, %v1155_v56, %v1145_v46  ;;  %v457_v62 = vsel %vm454_vm5, %v1146_v45, %v1156_v55  ;;  %v1047_v63 = vpack.c.bf16 %v1156_v55, %v1151_v59  ;;  %v441_v2 = vsel %vm438_vm4, %v1136_v50, %v1151_v59 }
  0xa0   : > { %v1164_v0 = vpop.permute.xlu1 %1163  ;;  %v439_v1 = vsel %vm438_vm4, %v1150_v60, %v1135_v51  ;;  %v1159_v5 = vpop.permute.xlu0 %1158  ;;  %v1049_v7 = vpack.c.bf16 %v457_v62, %v441_v2 }
  0xa1   : > { %v1166_v3 = vunpack.i.h.bf16 %v1164_v0  ;;  %v1165_v4 = vunpack.i.l.bf16 %v1164_v0  ;;  %v1033_v6 = vpack.c.bf16 %v455_v61, %v439_v1  ;;  %v1161_v8 = vunpack.i.h.bf16 %v1159_v5  ;;  %1048 = vmatprep.subr.bf16.mxu1 %v1047_v63 }
  0xa2   : > { %v1160_v10 = vunpack.i.l.bf16 %v1159_v5  ;;  %1050 = vmatpush1.bf16.msra.mxu1 %v1049_v7 }
  0xa3   : > { %1034 = vmatpush1.bf16.msra.mxu0 %v1033_v6  ;;  %v488_v11 = vsel %vm486_vm7, %v1165_v4, %v1166_v3  ;;  %v812_v6 = vlaneseq }
  0xa4   : > { %v1174_v12 = vpop.permute.xlu1 %1173  ;;  %v472_v13 = vsel %vm470_vm6, %v1160_v10, %v1161_v8  ;;  %v1169_v16 = vpop.permute.xlu0 %1168 }
  0xa5   : > { %v1176_v14 = vunpack.i.h.bf16 %v1174_v12  ;;  %v1175_v15 = vunpack.i.l.bf16 %v1174_v12  ;;  %v1035_v17 = vpack.c.bf16 %v488_v11, %v472_v13  ;;  %v1171_v18 = vunpack.i.h.bf16 %v1169_v16 }
  0xa6   : > { %v1170_v19 = vunpack.i.l.bf16 %v1169_v16 }
  0xa7   : > { %1036 = vmatprep.subr.bf16.mxu0 %v1035_v17  ;;  %v487_v20 = vsel %vm486_vm7, %v1175_v15, %v1165_v4  ;;  %v489_v21 = vsel %vm486_vm7, %v1166_v3, %v1176_v14  ;;  %v1051_v22 = vpack.c.bf16 %v1176_v14, %v1171_v18  ;;  %v473_v25 = vsel %vm470_vm6, %v1161_v8, %v1171_v18 }
  0xa8   : > { %v499_v23 = vpop.permute.xlu1 %498  ;;  %v471_v24 = vsel %vm470_vm6, %v1170_v19, %v1160_v10  ;;  %v497_v26 = vpop.permute.xlu0 %496  ;;  %v1053_v28 = vpack.c.bf16 %v489_v21, %v473_v25  ;;  %v813_v21 = vshrl.u32 %v812_v6, 7 }
  0xa9   : > { %v1037_v27 = vpack.c.bf16 %v487_v20, %v471_v24  ;;  %1052 = vmatprep.subr.bf16.mxu1 %v1051_v22  ;;  %v504_v29 = vsel %vm502_vm8, %v497_v26, %v499_v23 }
  0xaa   : > { %1054 = vmatpush1.bf16.msra.mxu1 %v1053_v28 }
  0xab   : > { %1038 = vmatpush1.bf16.msra.mxu0 %v1037_v27 }
  0xac   : > { %531 = vmatprep.subr.mxu0 %v504_v29  ;;  %v501_v30 = vpop.permute.xlu1 %500  ;;  %v495_v31 = vpop.permute.xlu0 %494 }
  0xad   : > { %602 = vmatprep.subr.mxu1 %v501_v30  ;;  %v505_v32 = vsel %vm502_vm8, %v499_v23, %v501_v30  ;;  %v503_v34 = vsel %vm502_vm8, %v495_v31, %v497_v26 }
  0xae   : > { %603 = vmatpush1.msra.mxu1 %v505_v32 }
  0xaf   : > { %532 = vmatpush1.msra.mxu0 %v503_v34  ;;  %1020 = vmatmul.mubr.msk.f32.vlgmr.msra.gmra.mrb[0].mxu1 %vm511_vm9, %v510_v33 }
  0xb0   : > { %1019 = vmatmul.mubr.msk.f32.vlgmr.msra.gmra.mrb[0].mxu0 %vm511_vm9, %v510_v33 }
  0xbd   : > { %v1446_v39 = vpop.permute.xlu1 %800 }
 0x182   : > { %v1386_v36 = vpop.f32.mrb[0].mxu1 }
 0x183   : > { %v1384_v35 = vpop.f32.mrb[0].mxu0  ;;  %v654_v38 = vpop.f32.mrb[1].mxu1 }
 0x184   : > { %763 = vrot.lane.b32.xlu1 %v1384_v35, %s1224_s8  ;;  %661 = vrot.lane.b32.xlu0 %v1384_v35, %s1220_s16  ;;  %v1392_v37 = vpop.f32.mrb[1].mxu0 }
 0x188   : > { %767 = vrot.lane.b32.xlu1 %v1386_v36, %s1224_s8  ;;  %665 = vrot.lane.b32.xlu0 %v1386_v36, %s1220_s16 }
 0x18c   : > { %780 = vrot.lane.b32.xlu1 %v1384_v35, %s1228_s13  ;;  %678 = vrot.lane.b32.xlu0 %v1384_v35, %s1219_s15 }
 0x190   : > { %682 = vrot.lane.b32.xlu0 %v1386_v36, %s1219_s15  ;;  %663 = vrot.lane.b32.xlu1 %v1392_v37, %s1220_s16 }
 0x194   : > { %695 = vrot.lane.b32.xlu0 %v1384_v35, %s1221_s30  ;;  %667 = vrot.lane.b32.xlu1 %v654_v38, %s1220_s16 }
 0x198   : > { %699 = vrot.lane.b32.xlu0 %v1386_v36, %s1221_s30  ;;  %680 = vrot.lane.b32.xlu1 %v1392_v37, %s1219_s15 }
 0x19c   : > { %712 = vrot.lane.b32.xlu0 %v1384_v35, %s1223_s7  ;;  %684 = vrot.lane.b32.xlu1 %v654_v38, %s1219_s15  ;;  %s1056_s15 = smul.u32 6, %s1535_s22 }
 0x19e   : > { %s362_s16 = sadd.s32 %s1056_s15, %s1539_s28 }
 0x19f   : > { %s1016_s20 = sshll.u32 %s362_s16, 3 }
 0x1a0   : > { %716 = vrot.lane.b32.xlu0 %v1386_v36, %s1223_s7  ;;  %697 = vrot.lane.b32.xlu1 %v1392_v37, %s1221_s30 }
 0x1a4   : > { %729 = vrot.lane.b32.xlu0 %v1384_v35, %s1222_s29  ;;  %701 = vrot.lane.b32.xlu1 %v654_v38, %s1221_s30 }
 0x1a8   : > { %733 = vrot.lane.b32.xlu0 %v1386_v36, %s1222_s29  ;;  %714 = vrot.lane.b32.xlu1 %v1392_v37, %s1223_s7 }
 0x1ac   : > { %746 = vrot.lane.b32.xlu0 %v1384_v35, %s1225_s9  ;;  %718 = vrot.lane.b32.xlu1 %v654_v38, %s1223_s7  ;;  %s1017_s7 = sshll.u32 %s1535_s22, 1 }
 0x1b0   : > { %750 = vrot.lane.b32.xlu0 %v1386_v36, %s1225_s9  ;;  %731 = vrot.lane.b32.xlu1 %v1392_v37, %s1222_s29 }
 0x1b4   : > { %752 = vrot.lane.b32.xlu0 %v654_v38, %s1225_s9  ;;  %735 = vrot.lane.b32.xlu1 %v654_v38, %s1222_s29  ;;  %s364_s29 = scalar_lea.vmem %s1522_s5, %s1016_s20 }
 0x1b8   : > { %765 = vrot.lane.b32.xlu0 %v1392_v37, %s1224_s8  ;;  %748 = vrot.lane.b32.xlu1 %v1392_v37, %s1225_s9 }
 0x1bc   : > { %769 = vrot.lane.b32.xlu0 %v654_v38, %s1224_s8  ;;  %784 = vrot.lane.b32.xlu1 %v1386_v36, %s1228_s13  ;;  %s371_s8 = sadd.s32 %s1017_s7, %s1541_s21 }
 0x1bd   : > { %s1018_s9 = sshll.u32 %s371_s8, 3 }
 0x1be   : > { %s373_s12 = scalar_lea.vmem %s1523_s6, %s1018_s9 }
 0x1c0   : > { %782 = vrot.lane.b32.xlu0 %v1392_v37, %s1228_s13 }
 0x1c4   : > { %786 = vrot.lane.b32.xlu0 %v654_v38, %s1228_s13  ;;  %v818_v38 = vsub.s32 1, %v813_v21 }
 0x1f6   : > { %v1448_v40 = vpop.permute.xlu1 %763  ;;  %v662_v41 = vpop.permute.xlu0 %661 }
 0x1fa   : > { %v1450_v42 = vpop.permute.xlu1 %767  ;;  %v666_v43 = vpop.permute.xlu0 %665 }
 0x1fe   : > { %v1452_v44 = vpop.permute.xlu1 %780  ;;  %v679_v45 = vpop.permute.xlu0 %678 }
 0x202   : > { %v683_v46 = vpop.permute.xlu0 %682  ;;  %v664_v47 = vpop.permute.xlu1 %663 }
 0x203   : > { %v669_v62 = vsel %vm390_vm1, %v662_v41, %v664_v47  ;;  %v670_v63 = vsel %vm390_vm1, %v664_v47, %v666_v43 }
 0x204   : > { %v675_v4 = vmax.f32 %v1384_v35, %v669_v62  ;;  %v676_v5 = vmax.f32 %v1392_v37, %v670_v63 }
 0x206   : > { %v696_v48 = vpop.permute.xlu0 %695  ;;  %v668_v49 = vpop.permute.xlu1 %667 }
 0x207   : > { %v671_v7 = vsel %vm390_vm1, %v666_v43, %v668_v49 }
 0x208   : > { %v677_v18 = vmax.f32 %v1386_v36, %v671_v7  ;;  %v814_v36 = vsub.s32 0, %v813_v21 }
 0x20a   : > { %v700_v50 = vpop.permute.xlu0 %699  ;;  %v681_v51 = vpop.permute.xlu1 %680 }
 0x20b   : > { %v686_v2 = vsel %vm406_vm2, %v679_v45, %v681_v51  ;;  %v687_v3 = vsel %vm406_vm2, %v681_v51, %v683_v46  ;;  %v819_v51 = vrot.slane %v1346_v9, %v818_v38 }
 0x20c   : > { %v692_v11 = vmax.f32 %v675_v4, %v686_v2  ;;  %v693_v12 = vmax.f32 %v676_v5, %v687_v3 }
 0x20d   : > { %vm825_vm11 = vcmp.eq.s32.totalorder %v819_v51, 1 }
 0x20e   : > { %v713_v52 = vpop.permute.xlu0 %712  ;;  %v685_v53 = vpop.permute.xlu1 %684 }
 0x20f   : > { %v688_v15 = vsel %vm406_vm2, %v683_v46, %v685_v53 }
 0x210   : > { %v694_v25 = vmax.f32 %v677_v18, %v688_v15 }
 0x212   : > { %v717_v54 = vpop.permute.xlu0 %716  ;;  %v698_v55 = vpop.permute.xlu1 %697 }
 0x213   : > { %v703_v8 = vsel %vm422_vm3, %v696_v48, %v698_v55  ;;  %v704_v10 = vsel %vm422_vm3, %v698_v55, %v700_v50  ;;  %v815_v48 = vrot.slane %v1346_v9, %v814_v36 }
 0x214   : > { %v709_v19 = vmax.f32 %v692_v11, %v703_v8  ;;  %v710_v20 = vmax.f32 %v693_v12, %v704_v10 }
 0x215   : > { %vm824_vm10 = vcmp.eq.s32.totalorder %v815_v48, 1 }
 0x216   : > { %v730_v56 = vpop.permute.xlu0 %729  ;;  %v702_v57 = vpop.permute.xlu1 %701 }
 0x217   : > { %v705_v22 = vsel %vm422_vm3, %v700_v50, %v702_v57 }
 0x218   : > { %v711_v33 = vmax.f32 %v694_v25, %v705_v22 }
 0x21a   : > { %v734_v58 = vpop.permute.xlu0 %733  ;;  %v715_v59 = vpop.permute.xlu1 %714 }
 0x21b   : > { %v720_v16 = vsel %vm438_vm4, %v713_v52, %v715_v59  ;;  %v721_v17 = vsel %vm438_vm4, %v715_v59, %v717_v54  ;;  %v822_v52 = vsub.s32 2, %v813_v21 }
 0x21c   : > { %v726_v26 = vmax.f32 %v709_v19, %v720_v16  ;;  %v727_v27 = vmax.f32 %v710_v20, %v721_v17 }
 0x21d   : > { %v823_v63 = vrot.slane %v1346_v9, %v822_v52 }
 0x21e   : > { %v747_v60 = vpop.permute.xlu0 %746  ;;  %v719_v61 = vpop.permute.xlu1 %718 }
 0x21f   : > { %v722_v30 = vsel %vm438_vm4, %v717_v54, %v719_v61  ;;  %vm826_vm12 = vcmp.eq.s32.totalorder %v823_v63, 1 }
 0x220   : > { %v728_v41 = vmax.f32 %v711_v33, %v722_v30 }
 0x222   : > { %v751_v0 = vpop.permute.xlu0 %750  ;;  %v732_v1 = vpop.permute.xlu1 %731 }
 0x223   : > { %v737_v23 = vsel %vm454_vm5, %v730_v56, %v732_v1  ;;  %v738_v24 = vsel %vm454_vm5, %v732_v1, %v734_v58 }
 0x224   : > { %v743_v34 = vmax.f32 %v726_v26, %v737_v23  ;;  %v744_v35 = vmax.f32 %v727_v27, %v738_v24 }
 0x226   : > { %v753_v13 = vpop.permute.xlu0 %752  ;;  %v736_v14 = vpop.permute.xlu1 %735 }
 0x227   : > { %v739_v37 = vsel %vm454_vm5, %v734_v58, %v736_v14  ;;  %v756_v57 = vsel %vm470_vm6, %v751_v0, %v753_v13 }
 0x228   : > { %v745_v47 = vmax.f32 %v728_v41, %v739_v37 }
 0x22a   : > { %v766_v28 = vpop.permute.xlu0 %765  ;;  %v749_v29 = vpop.permute.xlu1 %748 }
 0x22b   : > { %v754_v31 = vsel %vm470_vm6, %v747_v60, %v749_v29  ;;  %v755_v32 = vsel %vm470_vm6, %v749_v29, %v751_v0  ;;  %v771_v49 = vsel %vm486_vm7, %v1448_v40, %v766_v28  ;;  %v772_v50 = vsel %vm486_vm7, %v766_v28, %v1450_v42 }
 0x22c   : > { %v760_v43 = vmax.f32 %v743_v34, %v754_v31  ;;  %v761_v45 = vmax.f32 %v744_v35, %v755_v32  ;;  %v762_v60 = vmax.f32 %v745_v47, %v756_v57 }
 0x22e   : > { %v770_v46 = vpop.permute.xlu0 %769  ;;  %v785_v53 = vpop.permute.xlu1 %784  ;;  %v777_v55 = vmax.f32 %v760_v43, %v771_v49  ;;  %v778_v56 = vmax.f32 %v761_v45, %v772_v50 }
 0x22f   : > { %v773_v58 = vsel %vm486_vm7, %v1450_v42, %v770_v46 }
 0x230   : > { %v779_v0 = vmax.f32 %v762_v60, %v773_v58 }
 0x232   : > { %v783_v54 = vpop.permute.xlu0 %782 }
 0x233   : > { %v788_v59 = vsel %vm502_vm8, %v1452_v44, %v783_v54  ;;  %v789_v40 = vsel %vm502_vm8, %v783_v54, %v785_v53 }
 0x234   : > { %v794_v61 = vmax.f32 %v777_v55, %v788_v59  ;;  %v795_v62 = vmax.f32 %v778_v56, %v789_v40 }
 0x236   : > { %v803_v1 = vadd.f32 %v1446_v39, %v794_v61  ;;  %v804_v42 = vadd.f32 %v1446_v39, %v795_v62  ;;  %v787_v2 = vpop.permute.xlu0 %786 }
 0x237   : > { %v790_v44 = vsel %vm502_vm8, %v785_v53, %v787_v2 }
 0x238   : > { %806 = vst [vmem:[%s364_s29] sm:$0xff] %v803_v1  ;;  %807 = vst [vmem:[%s364_s29 + $0x8] sm:$0xff] %v804_v42  ;;  %v796_v3 = vmax.f32 %v779_v0, %v790_v44  ;;  %v827_v4 = vsel %vm824_vm10, %v803_v1, 0.0  ;;  %v828_v5 = vsel %vm825_vm11, %v804_v42, 0.0 }
 0x239   : > { %v830_v9 = vadd.f32 %v828_v5, %v827_v4  ;;  %v834_v6 = vmul.f32 %v827_v4, %v827_v4  ;;  %v835_v7 = vmul.f32 %v828_v5, %v828_v5 }
 0x23a   : > { %v805_v8 = vadd.f32 %v1446_v39, %v796_v3 }
 0x23b   : > { %v837_v10 = vadd.f32 %v835_v7, %v834_v6 }
 0x23c   : > { %808 = vst [vmem:[%s364_s29 + $0x10] sm:$0xff] %v805_v8  ;;  %v829_v11 = vsel %vm826_vm12, %v805_v8, 0.0 }
 0x23d   : > { %v831_v12 = vadd.f32 %v830_v9, %v829_v11  ;;  %v836_v13 = vmul.f32 %v829_v11, %v829_v11 }
 0x23f   : > { %832 = vadd.xlane.f32.xlu1 %v831_v12  ;;  %v838_v14 = vadd.f32 %v837_v10, %v836_v13 }
 0x241   : > { %839 = vadd.xlane.f32.xlu0 %v838_v14 }
 0x2cc   : > { %v833_v39 = vpop.xlane.xlu1 %832 }
 0x2ce   : > { %v840_v15 = vpop.xlane.xlu0 %839 }
 0x2cf   : > { %v842_v16 = vsel %vm841_vm13, %v833_v39, %v840_v15 }
 0x2d0   : > { %844 = vst.msk [vmem:[%s373_s12] sm:$0xff] %vm843_vm14, %v842_v16 }
 0x2d1 PF: > { %s17_s25 = sadd.s32 1, %s1217_s25   ;;  %s1524_s21 = smov %s1209_s23 }
 0x2d2   : > { %p14_p10 = scmp.ge.s32.totalorder %s17_s25, 6   ;;  %s1525_s22 = smov %s1213_s24 }
 0x2d3   : > { %s1526_s23 = smov %s1529_s26  ;;  %s1527_s24 = smov %s1533_s27 }
 0x2d4   :  { %16 = sbr.rel (!%p14_p10) target bundleno = 3 (0x3), region = 88 }

// kernel: block8_forward.5
= control target key start
LH: loop header
LB: loop body
LE: loop exit
PB: predicated region body
PF: predicated region fallthrough
CT: control target
= control target key end

     0   :  { %s498_s15 = smov 0   ;;  %s500_s16 = smov 0   ;;  %s540_s0 = inlined_call_operand.vmem [shape: f32[2,8,384], index: 0, kind: input, shape index: {}]   ;;  %s541_s1 = inlined_call_operand.vmem [shape: f32[2,8,384], index: 1, kind: input, shape index: {}]   ;;  %s542_s2 = inlined_call_operand.vmem [shape: f32[8,1], index: 2, kind: input, shape index: {}]   ;;  %s543_s3 = inlined_call_operand.vmem [shape: f32[8,1], index: 3, kind: input, shape index: {}]   ;;  %s544_s4 = inlined_call_operand.vmem [shape: f32[2,8,384], index: 4, kind: output, shape index: {}]  }
   0x1   :  { %s502_s17 = smov 0  }
   0x2 LB: > { %s26_s18 = sadd.s32 1, %s466_s16  ;;  %p415_p0 = scmp.ge.s32.totalorder %s470_s17, 1  ;;  %s470_s17 = sphi %s502_s17, %s14_s17   ;;  %s466_s16 = sphi %s500_s16, %s546_s16   ;;  %s462_s15 = sphi %s498_s15, %s545_s15  }
   0x3   : > { %p28_p1 = scmp.ge.s32.totalorder %s26_s18, 2  ;;  %p200_p2 = scmp.lt.s32.totalorder %s470_s17, 3 }
   0x5   : > { %s548_s18 = smov (%p28_p1, %s26_s18), 0  ;;  %p201_p3 = pnand %p415_p0, %p200_p2 }
   0x6   : > { %v273_v0 = vld [vmem:[%s542_s2] sm:$0xff] (!%p201_p3)  ;;  %v472_v1 = vmov (!%p201_p3), 0   ;;  %p244_p4 = scmp.lt.s32.totalorder (!%p201_p3), %s462_s15, 1 }
   0x7   : > { %204 = sbr.rel (%p201_p3) target bundleno = 148 (0x94), region = 36  ;;  %447 = vset.pattern.permute.xlu0 (!%p201_p3), %v472_v1  ;;  %v285_v2 = vld [vmem:[%s543_s3] sm:$0xff] (!%p201_p3) }
   0x8   : > { %279 = vperm.xlu0 (!%p201_p3), %447, %v273_v0  }
   0xc   : > { %288 = vperm.xlu0 (!%p201_p3), %447, %v285_v2  }
   0xe   : > { %s550_s15 = smov (!%p244_p4, %s462_s15), 1 }
   0xf   : > { %s421_s23 = smul.u32 24, %s550_s15 }
  0x11   : > { %s251_s26 = scalar_lea.vmem %s540_s0, %s421_s23  ;;  %s261_s29 = scalar_lea.vmem %s541_s1, %s421_s23 }
  0x12   : > { %v274_v4 = vld [vmem:[%s251_s26] sm:$0xff]  ;;  %v275_v5 = vld [vmem:[%s251_s26 + $0x8] sm:$0xff]  ;;  %v276_v6 = vld [vmem:[%s251_s26 + $0x10] sm:$0xff]  ;;  %s271_s6 = scalar_lea.vmem %s544_s4, %s421_s23 }
  0x13   : > { %v294_v11 = vld [vmem:[%s261_s29] sm:$0xff]  ;;  %v295_v12 = vld [vmem:[%s261_s29 + $0x8] sm:$0xff]  ;;  %v296_v13 = vld [vmem:[%s261_s29 + $0x10] sm:$0xff] }
  0x87   : > { %v280_v3 = vpop.permute.xlu0 %279 }
  0x88   : > { %v282_v7 = vmul.f32 %v280_v3, %v274_v4  ;;  %v283_v8 = vmul.f32 %v280_v3, %v275_v5  ;;  %v284_v9 = vmul.f32 %v280_v3, %v276_v6 }
  0x8b   : > { %v289_v10 = vpop.permute.xlu0 %288 }
  0x8c   : > { %v291_v14 = vadd.f32 %v289_v10, %v282_v7  ;;  %v292_v15 = vadd.f32 %v289_v10, %v283_v8  ;;  %v293_v16 = vadd.f32 %v289_v10, %v284_v9 }
  0x8e   : > { %v297_v17 = vadd.f32 %v294_v11, %v291_v14  ;;  %v298_v18 = vadd.f32 %v295_v12, %v292_v15  ;;  %v299_v19 = vadd.f32 %v296_v13, %v293_v16 }
  0x90   : > { %v300_v20 = vmax.f32 %v297_v17, 0.0  ;;  %v301_v21 = vmax.f32 %v298_v18, 0.0  ;;  %v302_v22 = vmax.f32 %v299_v19, 0.0 }
  0x92   : > { %303 = vst [vmem:[%s271_s6] sm:$0xff] %v300_v20  ;;  %304 = vst [vmem:[%s271_s6 + $0x8] sm:$0xff] %v301_v21 }
  0x93   : > { %305 = vst [vmem:[%s271_s6 + $0x10] sm:$0xff] %v302_v22 }
  0x94 PF: > { %s14_s17 = sadd.s32 1, %s470_s17   ;;  %s545_s15 = smov %s466_s16 }
  0x95   : > { %p11_p5 = scmp.ge.s32.totalorder %s14_s17, 4   ;;  %s546_s16 = smov %s548_s18 }
  0x97   :  { %13 = sbr.rel (!%p11_p5) target bundleno = 2 (0x2), region = 69 }

// kernel: block8_forward.4
= control target key start
LH: loop header
LB: loop body
LE: loop exit
PB: predicated region body
PF: predicated region fallthrough
CT: control target
= control target key end

     0   :  { %s1394_s13 = smov 0   ;;  %s1396_s14 = smov 0   ;;  %s1559_s0 = inlined_call_operand.vmem [shape: f32[2,8,768], index: 0, kind: input, shape index: {}, may-alias: {0,1}]   ;;  %s1560_s1 = inlined_call_operand.vmem [shape: f32[2,8,768], index: 1, kind: input, shape index: {}, may-alias: {0,1}]   ;;  %s1561_s2 = inlined_call_operand.vmem [shape: f32[8,72], index: 2, kind: input, shape index: {}]   ;;  %s1562_s3 = inlined_call_operand.vmem [shape: f32[8,1], index: 3, kind: input, shape index: {}]   ;;  %s1563_s4 = inlined_call_operand.vmem [shape: f32[8,1], index: 4, kind: input, shape index: {}]   ;;  %s1564_s5 = inlined_call_operand.vmem [shape: f32[8,1], index: 5, kind: input, shape index: {}]   ;;  %s1565_s6 = inlined_call_operand.vmem [shape: f32[1,768], index: 6, kind: input, shape index: {}, may-alias: {6,7}]   ;;  %s1566_s7 = inlined_call_operand.vmem [shape: f32[1,768], index: 7, kind: input, shape index: {}, may-alias: {6,7}]   ;;  %s1567_s8 = inlined_call_operand.vmem [shape: f32[1,384], index: 8, kind: input, shape index: {}]   ;;  %s1568_s9 = inlined_call_operand.vmem [shape: f32[2,8,384], index: 9, kind: output, shape index: {0}]   ;;  %s1569_s10 = inlined_call_operand.vmem [shape: f32[2,1,8,2], index: 10, kind: output, shape index: {1}]  }
   0x1   :  { %s1398_s15 = smov 0  }
   0x2 LB: > { %s33_s16 = sadd.s32 1, %s1320_s14  ;;  %p1113_p0 = scmp.ge.s32.totalorder %s1324_s15, 1  ;;  %s1324_s15 = sphi %s1398_s15, %s21_s15   ;;  %s1320_s14 = sphi %s1396_s14, %s1579_s14   ;;  %s1316_s13 = sphi %s1394_s13, %s1578_s13  }
   0x3   : > { %p35_p1 = scmp.ge.s32.totalorder %s33_s16, 2  ;;  %p393_p2 = scmp.lt.s32.totalorder %s1324_s15, 3 }
   0x5   : > { %s1581_s16 = smov (%p35_p1, %s33_s16), 0  ;;  %p394_p3 = pnand %p1113_p0, %p393_p2 }
   0x6   : > { %v557_v0 = vld [vmem:[%s1563_s4] sm:$0xff] (!%p394_p3)  ;;  %p470_p4 = scmp.lt.s32.totalorder (!%p394_p3), %s1316_s13, 1  ;;  %v1326_v1 = vmov (!%p394_p3), 0   ;;  %v532_v3 = vlaneseq (!%p394_p3)  ;;  %v1327_v45 = vmov (!%p394_p3), 0.0|0.0   ;;  %s1328_s17 = smov (!%p394_p3), 126   ;;  %v1334_v50 = vmov (!%p394_p3), 0.0  }
   0x7   : > { %397 = sbr.rel (%p394_p3) target bundleno = 666 (0x29a), region = 56  ;;  %1231 = vset.pattern.permute.xlu0 (!%p394_p3), %v1326_v1  ;;  %v567_v2 = vld [vmem:[%s1564_s5] sm:$0xff] (!%p394_p3)  ;;  %1177 = vmatprep.subr.bf16.mxu1 (!%p394_p3), %v1327_v45  ;;  %s1329_s18 = smov (!%p394_p3), 127   ;;  %vm1337_vm8 = vmmov (!%p394_p3), 0   ;;  %vm621_vm9 = vcmask (!%p394_p3), 1039360   ;;  %vm1338_vm10 = vmmov (!%p394_p3), 1  }
   0x8   : > { %560 = vperm.xlu0 (!%p394_p3), %1231, %v557_v0   ;;  %v1421_v4 = vshrl.u32 (!%p394_p3), %v532_v3, 7  ;;  %v529_v7 = vld [vmem:[%s1565_s6] sm:$0x7] (!%p394_p3)  ;;  %v1118_v9 = vld [vmem:[%s1566_s7 + $0x3] sm:$0x7] (!%p394_p3)  ;;  %s1330_s19 = smov (!%p394_p3), 106   ;;  %808 = vmatprep.mubr.f32.mxu0 (!%p394_p3), %v1334_v50 }
   0x9   : > { %s1331_s20 = smov (!%p394_p3), 107   ;;  %s1332_s21 = smov (!%p394_p3), 86   ;;  %1156 = vmatprep.mubr.msk.f32.mxu1 (!%p394_p3), %vm1337_vm8, %v1334_v50  ;;  %v734_v51 = vld [vmem:[%s1562_s3] sm:$0xff] (!%p394_p3)  ;;  %vm636_vm14 = vcmask (!%p394_p3), 1031168   ;;  %vm651_vm15 = vcmask (!%p394_p3), 875520  }
   0xa   : > { %v538_v5 = vsub.s32 (!%p394_p3), 1, %v1421_v4  ;;  %v542_v6 = vsub.s32 (!%p394_p3), 2, %v1421_v4  ;;  %v1430_v8 = vsub.s32 (!%p394_p3), 0, %v1421_v4  ;;  %s1333_s22 = smov (!%p394_p3), 105   ;;  %s1336_s24 = smov (!%p394_p3), 85  }
   0xc   : > { %570 = vperm.xlu0 (!%p394_p3), %1231, %v567_v2   ;;  %v539_v10 = vrot.slane (!%p394_p3), %v529_v7, %v538_v5  ;;  %v543_v11 = vrot.slane (!%p394_p3), %v529_v7, %v542_v6  ;;  %v535_v12 = vrot.slane (!%p394_p3), %v529_v7, %v1430_v8  ;;  %v551_v13 = vrot.slane (!%p394_p3), %v1118_v9, %v1430_v8 }
   0xe   : > { %s1583_s13 = smov (!%p470_p4, %s1316_s13), 1  ;;  %vm554_vm0 = vcmp.gt.f32.partialorder %v539_v10, 0.0  ;;  %vm555_vm1 = vcmp.gt.f32.partialorder %v543_v11, 0.0  ;;  %vm553_vm2 = vcmp.gt.f32.partialorder %v535_v12, 0.0  ;;  %vm556_vm3 = vcmp.gt.f32.partialorder %v551_v13, 0.0 }
   0xf   : > { %s1190_s23 = smul.u32 48, %s1583_s13  ;;  %v582_v15 = vsel %vm554_vm0, 1, %v1326_v1  ;;  %v583_v16 = vsel %vm555_vm1, 1, %v1326_v1  ;;  %v581_v21 = vsel %vm553_vm2, 1, %v1326_v1  ;;  %v584_v22 = vsel %vm556_vm3, 1, %v1326_v1 }
  0x10   : > { %v592_v23 = vrot.slane %v582_v15, %v1430_v8  ;;  %v596_v24 = vrot.slane %v583_v16, %v1430_v8  ;;  %v588_v30 = vrot.slane %v581_v21, %v1430_v8  ;;  %v600_v31 = vrot.slane %v584_v22, %v1430_v8  ;;  %s1192_s11 = smul.u32 24, %s1583_s13 }
  0x11   : > { %s1127_s26 = sadd.s32 24, %s1190_s23  ;;  %s477_s29 = scalar_lea.vmem %s1559_s0, %s1190_s23  ;;  %vm666_vm0 = vcmask 867328   ;;  %vm681_vm1 = vcmask 859136   ;;  %vm696_vm2 = vcmask 703488   ;;  %vm711_vm3 = vcmask 695296  }
  0x12   : > { %s488_s12 = scalar_lea.vmem %s1560_s1, %s1127_s26  ;;  %v525_v14 = vld [vmem:[%s477_s29] sm:$0xff]  ;;  %v526_v18 = vld [vmem:[%s477_s29 + $0x8] sm:$0xff]  ;;  %v527_v19 = vld [vmem:[%s477_s29 + $0x10] sm:$0xff]  ;;  %vm1459_vm4 = vcmp.eq.s32.totalorder %v592_v23, 1  ;;  %vm1463_vm5 = vcmp.eq.s32.totalorder %v596_v24, 1  ;;  %vm1469_vm6 = vcmp.eq.s32.totalorder %v588_v30, 1 }
  0x13   : > { %v528_v20 = vld [vmem:[%s488_s12] sm:$0xff]  ;;  %vm604_vm7 = vcmp.eq.s32.totalorder %v600_v31, 1  ;;  %s1335_s23 = smov 84   ;;  %vm1160_vm11 = vmpackc.low %vm1338_vm10, %vm1459_vm4 }
  0x14   : > { %vm1494_vm12 = vmpackc.low %vm1338_vm10, %vm1469_vm6 }
  0x15   : > { %vm1179_vm13 = vmpackc.low %vm1338_vm10, %vm1463_vm5  ;;  %vm920_vm10 = vcmask 7168  }
  0x87   : > { %v561_v17 = vpop.permute.xlu0 %560 }
  0x88   : > { %v563_v25 = vmul.f32 %v561_v17, %v525_v14  ;;  %v564_v26 = vmul.f32 %v561_v17, %v526_v18  ;;  %v565_v27 = vmul.f32 %v561_v17, %v527_v19  ;;  %v566_v28 = vmul.f32 %v561_v17, %v528_v20 }
  0x8b   : > { %v571_v29 = vpop.permute.xlu0 %570 }
  0x8c   : > { %v1455_v32 = vadd.f32 %v571_v29, %v563_v25  ;;  %v574_v33 = vadd.f32 %v571_v29, %v564_v26  ;;  %v1457_v34 = vadd.f32 %v571_v29, %v565_v27  ;;  %v576_v35 = vadd.f32 %v571_v29, %v566_v28 }
  0x8e   : > { %v577_v38 = vmax.f32 %v1455_v32, 0.0  ;;  %v578_v39 = vmax.f32 %v574_v33, 0.0  ;;  %v579_v40 = vmax.f32 %v1457_v34, 0.0  ;;  %v580_v41 = vmax.f32 %v576_v35, 0.0 }
  0x90   : > { %v606_v43 = vsel %vm1459_vm4, %v578_v39, 0.0  ;;  %v607_v44 = vsel %vm1463_vm5, %v579_v40, 0.0  ;;  %v605_v47 = vsel %vm1469_vm6, %v577_v38, 0.0  ;;  %v608_v48 = vsel %vm604_vm7, %v580_v41, 0.0 }
  0x91   : > { %v1242_v46 = vpack.i.bf16 %v607_v44, %v606_v43  ;;  %v1252_v49 = vpack.i.bf16 %v608_v48, %v605_v47  ;;  %vm726_vm4 = vcmask 687104   ;;  %vm740_vm5 = vcmask 588800  }
  0x93   : > { %1243 = vrot.lane.b32.xlu0 %v1242_v46, %s1328_s17  ;;  %1233 = vrot.lane.b32.xlu1 %v1242_v46, %s1329_s18 }
  0x97   : > { %1253 = vrot.lane.b32.xlu0 %v1252_v49, %s1328_s17  ;;  %1238 = vrot.lane.b32.xlu1 %v1252_v49, %s1329_s18  ;;  %s516_s18 = scalar_lea.vmem %s1568_s9, %s1192_s11 }
  0x9b   : > { %1263 = vrot.lane.b32.xlu0 %v1242_v46, %s1330_s19  ;;  %1248 = vrot.lane.b32.xlu1 %v1242_v46, %s1331_s20 }
  0x9f   : > { %1273 = vrot.lane.b32.xlu0 %v1252_v49, %s1330_s19  ;;  %1258 = vrot.lane.b32.xlu1 %v1252_v49, %s1331_s20  ;;  %s1117_s19 = sshll.u32 %s1583_s13, 3 }
  0xa3   : > { %1283 = vrot.lane.b32.xlu0 %v1242_v46, %s1332_s21  ;;  %1268 = vrot.lane.b32.xlu1 %v1242_v46, %s1333_s22 }
  0xa7   : > { %1293 = vrot.lane.b32.xlu0 %v1252_v49, %s1332_s21  ;;  %1278 = vrot.lane.b32.xlu1 %v1252_v49, %s1333_s22  ;;  %s524_s22 = scalar_lea.vmem %s1569_s10, %s1117_s19 }
  0xab   : > { %720 = vrot.lane.b32.xlu0 %v606_v43, %s1335_s23  ;;  %1288 = vrot.lane.b32.xlu1 %v1242_v46, %s1336_s24 }
  0xaf   : > { %718 = vrot.lane.b32.xlu0 %v605_v47, %s1335_s23  ;;  %1298 = vrot.lane.b32.xlu1 %v1252_v49, %s1336_s24 }
  0xb3   : > { %737 = vperm.xlu0 %1231, %v734_v51   ;;  %722 = vrot.lane.b32.xlu1 %v607_v44, %s1335_s23 }
  0xb7   : > { %724 = vrot.lane.b32.xlu1 %v608_v48, %s1335_s23 }
 0x105   : > { %v1244_v52 = vpop.permute.xlu0 %1243  ;;  %v1234_v53 = vpop.permute.xlu1 %1233 }
 0x106   : > { %v1236_v54 = vunpack.i.h.bf16 %v1234_v53  ;;  %v1235_v55 = vunpack.i.l.bf16 %v1234_v53  ;;  %v1246_v63 = vunpack.i.h.bf16 %v1244_v52  ;;  %v1245_v0 = vunpack.i.l.bf16 %v1244_v52 }
 0x108   : > { %v623_v56 = vsel %vm621_vm9, %v1235_v55, %v1236_v54  ;;  %v638_v16 = vsel %vm636_vm14, %v1245_v0, %v1246_v63 }
 0x109   : > { %v1254_v57 = vpop.permute.xlu0 %1253  ;;  %v1239_v58 = vpop.permute.xlu1 %1238  ;;  %v1159_v59 = vpack.c.bf16 %v623_v56, %v578_v39 }
 0x10a   : > { %v1241_v60 = vunpack.i.h.bf16 %v1239_v58  ;;  %v1240_v61 = vunpack.i.l.bf16 %v1239_v58  ;;  %v1256_v14 = vunpack.i.h.bf16 %v1254_v57  ;;  %v1255_v15 = vunpack.i.l.bf16 %v1254_v57 }
 0x10b   : > { %1161 = vmatprep.subr.msk.bf16.mxu0 %vm1160_vm11, %v1159_v59  ;;  %vm922_vm11 = vcmask 15360  }
 0x10c   : > { %v622_v2 = vsel %vm621_vm9, %v1240_v61, %v1235_v55  ;;  %v624_v3 = vsel %vm621_vm9, %v1236_v54, %v1241_v60  ;;  %v637_v23 = vsel %vm636_vm14, %v1255_v15, %v1245_v0  ;;  %v639_v24 = vsel %vm636_vm14, %v1246_v63, %v1256_v14 }
 0x10d   : > { %v1264_v7 = vpop.permute.xlu0 %1263  ;;  %v1249_v9 = vpop.permute.xlu1 %1248  ;;  %v1162_v10 = vpack.c.bf16 %v622_v2, %v577_v38  ;;  %v1178_v11 = vpack.c.bf16 %v624_v3, %v579_v40 }
 0x10e   : > { %v1251_v12 = vunpack.i.h.bf16 %v1249_v9  ;;  %v1250_v13 = vunpack.i.l.bf16 %v1249_v9  ;;  %v1266_v25 = vunpack.i.h.bf16 %v1264_v7  ;;  %v1265_v26 = vunpack.i.l.bf16 %v1264_v7 }
 0x10f   : > { %1164 = vmatpush1.bf16.msk.msra.mxu0 %vm1494_vm12, %v1162_v10  ;;  %1180 = vmatpush3.bf16.msk.msra.mxu1 %vm1179_vm13, %v1178_v11 }
 0x110   : > { %v653_v17 = vsel %vm651_vm15, %v1250_v13, %v1251_v12  ;;  %1181 = vmatprep.subr.bf16.mxu1 %v1327_v45  ;;  %v668_v37 = vsel %vm666_vm0, %v1265_v26, %v1266_v25 }
 0x111   : > { %v1274_v18 = vpop.permute.xlu0 %1273  ;;  %v1259_v19 = vpop.permute.xlu1 %1258  ;;  %v1165_v20 = vpack.c.bf16 %v653_v17, %v638_v16  ;;  %v733_v16 = vld [vmem:[%s1561_s2] sm:$0xff] }
 0x112   : > { %v1261_v21 = vunpack.i.h.bf16 %v1259_v19  ;;  %v1260_v22 = vunpack.i.l.bf16 %v1259_v19  ;;  %v1276_v35 = vunpack.i.h.bf16 %v1274_v18  ;;  %v1275_v36 = vunpack.i.l.bf16 %v1274_v18  ;;  %v888_v19 = vld [vmem:[%s1567_s8] sm:$0x7] }
 0x113   : > { %1166 = vmatprep.subr.bf16.mxu0 %v1165_v20  ;;  %vm889_vm6 = vcmp.gt.f32.partialorder %v888_v19, 0.0 }
 0x114   : > { %v652_v27 = vsel %vm651_vm15, %v1260_v22, %v1250_v13  ;;  %v654_v28 = vsel %vm651_vm15, %v1251_v12, %v1261_v21  ;;  %v667_v44 = vsel %vm666_vm0, %v1275_v36, %v1265_v26  ;;  %v669_v46 = vsel %vm666_vm0, %v1266_v25, %v1276_v35 }
 0x115   : > { %v1284_v29 = vpop.permute.xlu0 %1283  ;;  %v1269_v30 = vpop.permute.xlu1 %1268  ;;  %v1167_v31 = vpack.c.bf16 %v652_v27, %v637_v23  ;;  %v1182_v32 = vpack.c.bf16 %v654_v28, %v639_v24  ;;  %v890_v20 = vsel %vm889_vm6, 1, %v1326_v1 }
 0x116   : > { %v1271_v33 = vunpack.i.h.bf16 %v1269_v30  ;;  %v1270_v34 = vunpack.i.l.bf16 %v1269_v30  ;;  %v1286_v47 = vunpack.i.h.bf16 %v1284_v29  ;;  %v1285_v48 = vunpack.i.l.bf16 %v1284_v29 }
 0x117   : > { %1168 = vmatpush1.bf16.msra.mxu0 %v1167_v31  ;;  %1183 = vmatpush3.bf16.msra.mxu1 %v1182_v32  ;;  %v898_v21 = vrot.slane %v890_v20, %v538_v5  ;;  %v902_v22 = vrot.slane %v890_v20, %v542_v6 }
 0x118   : > { %v683_v38 = vsel %vm681_vm1, %v1270_v34, %v1271_v33  ;;  %1184 = vmatprep.subr.bf16.mxu1 %v1327_v45  ;;  %v698_v59 = vsel %vm696_vm2, %v1285_v48, %v1286_v47 }
 0x119   : > { %v1279_v39 = vpop.permute.xlu1 %1278  ;;  %v1169_v40 = vpack.c.bf16 %v683_v38, %v668_v37  ;;  %v1294_v43 = vpop.permute.xlu0 %1293  ;;  %vm904_vm8 = vcmp.eq.s32.totalorder %v898_v21, 1  ;;  %vm905_vm9 = vcmp.eq.s32.totalorder %v902_v22, 1 }
 0x11a   : > { %v1281_v41 = vunpack.i.h.bf16 %v1279_v39  ;;  %v1280_v42 = vunpack.i.l.bf16 %v1279_v39  ;;  %v1296_v57 = vunpack.i.h.bf16 %v1294_v43  ;;  %v1295_v58 = vunpack.i.l.bf16 %v1294_v43 }
 0x11b   : > { %1170 = vmatprep.subr.bf16.mxu0 %v1169_v40 }
 0x11c   : > { %v682_v49 = vsel %vm681_vm1, %v1280_v42, %v1270_v34  ;;  %v684_v51 = vsel %vm681_vm1, %v1271_v33, %v1281_v41  ;;  %v697_v3 = vsel %vm696_vm2, %v1295_v58, %v1285_v48  ;;  %v699_v9 = vsel %vm696_vm2, %v1286_v47, %v1296_v57 }
 0x11d   : > { %v1289_v52 = vpop.permute.xlu1 %1288  ;;  %v1171_v53 = vpack.c.bf16 %v682_v49, %v667_v44  ;;  %v1185_v54 = vpack.c.bf16 %v684_v51, %v669_v46  ;;  %v721_v61 = vpop.permute.xlu0 %720 }
 0x11e   : > { %v1291_v55 = vunpack.i.h.bf16 %v1289_v52  ;;  %v1290_v56 = vunpack.i.l.bf16 %v1289_v52 }
 0x11f   : > { %1172 = vmatpush1.bf16.msra.mxu0 %v1171_v53  ;;  %1186 = vmatpush3.bf16.msra.mxu1 %v1185_v54 }
 0x120   : > { %v713_v60 = vsel %vm711_vm3, %v1290_v56, %v1291_v55  ;;  %1187 = vmatprep.subr.bf16.mxu1 %v1327_v45 }
 0x121   : > { %v1299_v62 = vpop.permute.xlu1 %1298  ;;  %v1173_v63 = vpack.c.bf16 %v713_v60, %v698_v59  ;;  %v719_v45 = vpop.permute.xlu0 %718 }
 0x122   : > { %v1301_v0 = vunpack.i.h.bf16 %v1299_v62  ;;  %v1300_v2 = vunpack.i.l.bf16 %v1299_v62  ;;  %v727_v17 = vsel %vm726_vm4, %v719_v45, %v721_v61 }
 0x123   : > { %1174 = vmatprep.subr.bf16.mxu0 %v1173_v63 }
 0x124   : > { %v712_v7 = vsel %vm711_vm3, %v1300_v2, %v1290_v56  ;;  %v714_v10 = vsel %vm711_vm3, %v1291_v55, %v1301_v0 }
 0x125   : > { %v723_v11 = vpop.permute.xlu1 %722  ;;  %v1175_v12 = vpack.c.bf16 %v712_v7, %v697_v3  ;;  %v1188_v13 = vpack.c.bf16 %v714_v10, %v699_v9 }
 0x126   : > { %v728_v14 = vsel %vm726_vm4, %v721_v61, %v723_v11 }
 0x127   : > { %1176 = vmatpush1.bf16.msra.mxu0 %v1175_v12  ;;  %1189 = vmatpush3.bf16.msra.mxu1 %v1188_v13 }
 0x128   : > { %760 = vmatprep.subr.mxu0 %v728_v14  ;;  %1154 = vmatprep.subr.mxu1 %v1334_v50  ;;  %v894_v50 = vrot.slane %v890_v20, %v1430_v8 }
 0x129   : > { %v725_v15 = vpop.permute.xlu1 %724 }
 0x12a   : > { %v729_v18 = vsel %vm726_vm4, %v723_v11, %v725_v15  ;;  %vm903_vm7 = vcmp.eq.s32.totalorder %v894_v50, 1 }
 0x12b   : > { %761 = vmatpush1.msra.mxu0 %v727_v17  ;;  %1155 = vmatpush3.msra.mxu1 %v729_v18 }
 0x12c   : > { %1121 = vmatmul.mubr.msk.f32.vlgmr.msra.gmra.mrb[0].mxu0 %vm740_vm5, %v733_v16  ;;  %1157 = vmatmul.mubr.msk.f32.vlgmr.msra.gmra.mrb[0].mxu1 %vm740_vm5, %v733_v16 }
 0x132   : > { %v738_v23 = vpop.permute.xlu0 %737 }
 0x1ff   : > { %v810_v24 = vpop.f32.mrb[0].mxu0  ;;  %v881_v25 = vpop.f32.mrb[0].mxu1 }
 0x200   : > { %v811_v26 = vadd.f32 %v810_v24, %v738_v23  ;;  %v882_v27 = vadd.f32 %v881_v25, %v738_v23  ;;  %v812_v1 = vpop.f32.mrb[1].mxu0  ;;  %v1158_v28 = vpop.f32.mrb[1].mxu1 }
 0x201   : > { %v813_v8 = vadd.f32 %v812_v1, %v738_v23 }
 0x202   : > { %885 = vst [vmem:[%s516_s18] sm:$0xff] %v811_v26  ;;  %v906_v5 = vsel %vm903_vm7, %v811_v26, 0.0  ;;  %887 = vst [vmem:[%s516_s18 + $0x10] sm:$0xff] %v882_v27  ;;  %v908_v29 = vsel %vm905_vm9, %v882_v27, 0.0 }
 0x203   : > { %v913_v4 = vmul.f32 %v906_v5, %v906_v5  ;;  %886 = vst [vmem:[%s516_s18 + $0x8] sm:$0xff] %v813_v8  ;;  %v907_v6 = vsel %vm904_vm8, %v813_v8, 0.0  ;;  %v915_v33 = vmul.f32 %v908_v29, %v908_v29 }
 0x204   : > { %v914_v30 = vmul.f32 %v907_v6, %v907_v6  ;;  %v909_v31 = vadd.f32 %v907_v6, %v906_v5 }
 0x206   : > { %v910_v32 = vadd.f32 %v909_v31, %v908_v29  ;;  %v916_v34 = vadd.f32 %v914_v30, %v913_v4 }
 0x208   : > { %911 = vadd.xlane.f32.xlu1 %v910_v32  ;;  %v917_v35 = vadd.f32 %v916_v34, %v915_v33 }
 0x20a   : > { %918 = vadd.xlane.f32.xlu0 %v917_v35 }
 0x295   : > { %v912_v36 = vpop.xlane.xlu1 %911 }
 0x297   : > { %v919_v37 = vpop.xlane.xlu0 %918 }
 0x298   : > { %v921_v38 = vsel %vm920_vm10, %v912_v36, %v919_v37 }
 0x299   : > { %923 = vst.msk [vmem:[%s524_s22] sm:$0xff] %vm922_vm11, %v921_v38 }
 0x29a PF: > { %s21_s15 = sadd.s32 1, %s1324_s15   ;;  %s1578_s13 = smov %s1320_s14 }
 0x29b   : > { %p18_p5 = scmp.ge.s32.totalorder %s21_s15, 4   ;;  %s1579_s14 = smov %s1581_s16 }
 0x29d   :  { %20 = sbr.rel (!%p18_p5) target bundleno = 2 (0x2), region = 110 }

</bundles_post_ra>
